<compile_context>
chip_gen: v5e
topology: v5e:2x2
jax: 0.10.0
libtpu: 0.0.40
codegen_flags: <defaults>
</compile_context>

<pallas_src>
import math
from functools import partial

import jax
import jax.numpy as jnp
from jax import lax
from jax.experimental import pallas as pl
from jax.experimental.pallas import tpu as pltpu


def _attention_head_kernel(x_ref, w_qkv_ref, b_qkv_ref, out_ref, probs_ref,
                           qkv_ref, *, head_dim, q_tile, exp_dtype):
    """One (batch, query-tile) grid step.

    x_ref:     (S, H)   full sequence for this batch element (matmul dtype)
    w_qkv_ref: (H, 3D)  fused [Wq/sqrt(D) | Wk | Wv]          (matmul dtype)
    b_qkv_ref: (1, 3D)  fused [bq/sqrt(D) | bk | bv]          (f32)
    out_ref:   (tq, D)  attention-output tile
    probs_ref: (tq, S)  attention-probs tile
    qkv_ref:   (S, 3D)  VMEM scratch holding Q(scaled)/K/V; persists across
                        the (sequential) query-tile axis of the same batch.
    """
    qi = pl.program_id(1)
    d = head_dim

    # Fused QKV projection for the whole sequence, once per batch element.
    @pl.when(qi == 0)
    def _():
        qkv = jnp.dot(x_ref[...], w_qkv_ref[...],
                      preferred_element_type=jnp.float32) + b_qkv_ref[...]
        qkv_ref[...] = qkv.astype(qkv_ref.dtype)

    row0 = pl.multiple_of(qi * q_tile, q_tile)
    q = qkv_ref[pl.ds(row0, q_tile), :][:, 0 * d:1 * d]   # (tq, D), pre-scaled
    k = qkv_ref[:, 1 * d:2 * d]                           # (S, D)
    v = qkv_ref[:, 2 * d:3 * d]                           # (S, D)

    # scores = q @ k^T without materializing a transpose: contract last dims.
    scores = lax.dot_general(
        q, k, dimension_numbers=(((1,), (1,)), ((), ())),
        preferred_element_type=jnp.float32)                # (tq, S)

    # Numerically stable softmax over the full key axis (K fully resident).
    m = jnp.max(scores, axis=-1, keepdims=True)
    e = jnp.exp((scores - m).astype(exp_dtype)).astype(jnp.float32)
    denom = jnp.sum(e, axis=-1, keepdims=True)
    # Approx reciprocal on the EUP: rows sum to 1 within ~2^-12 relative.
    probs = e * pl.reciprocal(denom, approx=True)          # (tq, S) f32

    # Dropout (eval mode) == identity.
    out = jnp.dot(probs.astype(v.dtype), v,
                  preferred_element_type=jnp.float32)      # (tq, D)

    out_ref[...] = out.astype(out_ref.dtype)
    probs_ref[...] = probs.astype(probs_ref.dtype)


def _pick_q_tile(seq_len):
    for t in (256, 128, 64, 32, 16, 8):
        if seq_len % t == 0:
            return t
    return seq_len


def _default_exp_dtype(matmul_dtype):
    # bf16 exp only where the EUP supports bf16 (v6e / v7x); keep f32 on v5e
    # and older chips.
    if jnp.dtype(matmul_dtype) != jnp.dtype(jnp.bfloat16):
        return jnp.float32
    try:
        kind = jax.devices()[0].device_kind.lower()
    except Exception:
        return jnp.float32
    return jnp.bfloat16 if ("v6" in kind or "v7" in kind) else jnp.float32


def _vmem_limit_bytes():
    # Generation-aware VMEM budget: ~3/4 of physical, capped at 100 MiB.
    # v7x: 64 MiB physical -> 48 MiB; v5e/v6e: 128 MiB -> ~96 MiB.
    cap = 64 * 1024 * 1024
    try:
        cap = int(getattr(pltpu.get_tpu_info(), "vmem_capacity_bytes", cap) or cap)
    except Exception:
        pass
    return min(cap * 3 // 4, 100 * 1024 * 1024)


def attention_head(x, wq, bq, wk, bk, wv, bv, *,
                   matmul_dtype=jnp.bfloat16,
                   exp_dtype=None,
                   probs_dtype=jnp.float32,
                   q_tile=None):
    """x: (B, S, H) f32; wq/wk/wv: (H, D) f32; bq/bk/bv: (1, D) f32.

    matmul_dtype controls the MXU operand dtype for all three matmuls
    (projection, QK^T, probs@V); accumulation, softmax and outputs stay f32.
    probs_dtype lets callers halve the probs writeback (e.g. bf16) if the
    consumer tolerates it.
    """
    B, S, H = x.shape
    D = wq.shape[1]

    if q_tile is None:
        q_tile = _pick_q_tile(S)
    assert S % q_tile == 0, "q_tile must divide the sequence length"
    num_q_tiles = S // q_tile

    if exp_dtype is None:
        exp_dtype = _default_exp_dtype(matmul_dtype)

    # Fuse the three projections into one weight/bias and fold 1/sqrt(D) into
    # the query slice (free at trace time; removes all in-kernel scaling).
    inv_sqrt_d = jnp.float32(1.0 / math.sqrt(D))
    w_qkv = jnp.concatenate([wq * inv_sqrt_d, wk, wv], axis=1).astype(matmul_dtype)
    b_qkv = jnp.concatenate([bq * inv_sqrt_d, bk, bv], axis=1).astype(jnp.float32)
    x_in = x.astype(matmul_dtype)

    kernel = partial(_attention_head_kernel, head_dim=D, q_tile=q_tile,
                     exp_dtype=exp_dtype)

    out, probs = pl.pallas_call(
        kernel,
        out_shape=(
            jax.ShapeDtypeStruct((B, S, D), jnp.float32),
            jax.ShapeDtypeStruct((B, S, S), probs_dtype),
        ),
        grid_spec=pltpu.PrefetchScalarGridSpec(
            num_scalar_prefetch=0,
            grid=(B, num_q_tiles),
            in_specs=[
                # Full sequence per batch element; constant across query tiles
                # so it is only re-DMA'd when the batch index changes.
                pl.BlockSpec((None, S, H), lambda b, qi: (b, 0, 0)),    # x
                pl.BlockSpec((H, 3 * D), lambda b, qi: (0, 0)),         # fused W
                pl.BlockSpec((1, 3 * D), lambda b, qi: (0, 0)),         # fused b
            ],
            out_specs=[
                pl.BlockSpec((None, q_tile, D), lambda b, qi: (b, qi, 0)),
                pl.BlockSpec((None, q_tile, S), lambda b, qi: (b, qi, 0)),
            ],
            scratch_shapes=[pltpu.VMEM((S, 3 * D), matmul_dtype)],
        ),
        compiler_params=pltpu.CompilerParams(
            # Batch shards across v7x's two TensorCores; the query-tile axis
            # carries the QKV scratch, so it must stay sequential.
            dimension_semantics=("parallel", "arbitrary"),
            vmem_limit_bytes=_vmem_limit_bytes(),
        ),
    )(x_in, w_qkv, b_qkv)
    return out, probs


def _reference(x, wq, bq, wk, bk, wv, bv):
    hp = lax.Precision.HIGHEST
    q = jnp.dot(x, wq, precision=hp) + bq
    k = jnp.dot(x, wk, precision=hp) + bk
    v = jnp.dot(x, wv, precision=hp) + bv
    s = jnp.einsum("bsd,btd->bst", q, k, precision=hp) / math.sqrt(wq.shape[1])
    p = jax.nn.softmax(s, axis=-1)
    o = jnp.einsum("bst,btd->bsd", p, v, precision=hp)
    return o, p


if __name__ == "__main__":
    # Small shapes consistent with the module (hidden_size=768, head_dim=64).
    B, S, D = 2, 128, 64
    H = 3 * 256

    key = jax.random.PRNGKey(0)
    kx, kq, kbq, kk, kbk, kv, kbv = jax.random.split(key, 7)

    x = jax.random.normal(kx, (B, S, H), dtype=jnp.float32)

    # PyTorch-like init: uniform(-1/sqrt(H), 1/sqrt(H)), deterministic.
    bound = 1.0 / math.sqrt(H)
    wq = jax.random.uniform(kq, (H, D), jnp.float32, -bound, bound)
    bq = jax.random.uniform(kbq, (1, D), jnp.float32, -bound, bound)
    wk = jax.random.uniform(kk, (H, D), jnp.float32, -bound, bound)
    bk = jax.random.uniform(kbk, (1, D), jnp.float32, -bound, bound)
    wv = jax.random.uniform(kv, (H, D), jnp.float32, -bound, bound)
    bv = jax.random.uniform(kbv, (1, D), jnp.float32, -bound, bound)

    ref_out, ref_probs = _reference(x, wq, bq, wk, bk, wv, bv)

    # --- f32 path, multi-tile query axis (exercises the flash-style tiling) ---
    out, probs = attention_head(x, wq, bq, wk, bk, wv, bv,
                                matmul_dtype=jnp.float32,
                                exp_dtype=jnp.float32,
                                q_tile=64)
    jax.block_until_ready((out, probs))
    assert jnp.allclose(out, ref_out, atol=1e-2, rtol=1e-2)
    assert jnp.allclose(probs, ref_probs, atol=2e-3)

    # --- default fast path: bf16 MXU operands (f32 accumulate), bf16 exp on
    #     v6e/v7x; compared against the f32 reference at bf16-level tolerance ---
    out_bf, probs_bf = attention_head(x, wq, bq, wk, bk, wv, bv)
    jax.block_until_ready((out_bf, probs_bf))
    assert jnp.allclose(out_bf, ref_out, atol=3e-2, rtol=3e-2)
    assert jnp.allclose(probs_bf, ref_probs, atol=5e-3)

    print("KERNEL_OK")
</pallas_src>

<mosaic_0001>
module attributes {stable_mosaic.version = 11 : i64} {
  func.func @_attention_head_kernel(%arg0: i32, %arg1: i32, %arg2: memref<1x128x768xf32, #tpu.memory_space<vmem>>, %arg3: memref<768x192xf32, #tpu.memory_space<vmem>>, %arg4: memref<1x192xf32, #tpu.memory_space<vmem>>, %arg5: memref<1x64x64xf32, #tpu.memory_space<vmem>>, %arg6: memref<1x64x128xf32, #tpu.memory_space<vmem>>, %arg7: memref<128x192xf32, #tpu.memory_space<vmem>>) attributes {dimension_semantics = [#tpu.dimension_semantics<parallel>, #tpu.dimension_semantics<arbitrary>], iteration_bounds = array<i64: 2, 2>, scalar_prefetch = 0 : i64, scratch_operands = 1 : i64, tpu.core_type = #tpu.core_type<tc>, window_params = [{transform_indices = @transform_0, window_bounds = array<i64: 1, 128, 768>}, {pipeline_mode = #tpu.pipeline_mode<synchronous>, transform_indices = @transform_1, window_bounds = array<i64: 768, 192>}, {pipeline_mode = #tpu.pipeline_mode<synchronous>, transform_indices = @transform_2, window_bounds = array<i64: 1, 192>}, {transform_indices = @transform_3, window_bounds = array<i64: 1, 64, 64>}, {transform_indices = @transform_4, window_bounds = array<i64: 1, 64, 128>}]} {
    %c0_i32 = arith.constant 0 : i32
    %0 = arith.cmpi eq, %arg1, %c0_i32 : i32
    %1 = arith.extui %0 : i1 to i32
    %c0_i32_0 = arith.constant 0 : i32
    %2 = arith.cmpi ne, %1, %c0_i32_0 : i32
    scf.if %2 {
      %c0_12 = arith.constant 0 : index
      %c0_13 = arith.constant 0 : index
      %c0_14 = arith.constant 0 : index
      %28 = vector.load %arg2[%c0_12, %c0_13, %c0_14] : memref<1x128x768xf32, #tpu.memory_space<vmem>>, vector<1x128x768xf32>
      %29 = vector.shape_cast %28 : vector<1x128x768xf32> to vector<128x768xf32>
      %c0_15 = arith.constant 0 : index
      %c0_16 = arith.constant 0 : index
      %30 = vector.load %arg3[%c0_15, %c0_16] : memref<768x192xf32, #tpu.memory_space<vmem>>, vector<768x192xf32>
      %cst_17 = arith.constant dense<0.000000e+00> : vector<128x192xf32>
      %31 = tpu.matmul %29, %30, %cst_17 {dimension_numbers = #tpu.dot_dimension_numbers<[1], [0], [0], [1], [0, 0, 1, 1], [], []>} : vector<128x768xf32>, vector<768x192xf32>, vector<128x192xf32> -> vector<128x192xf32>
      %c0_18 = arith.constant 0 : index
      %c0_19 = arith.constant 0 : index
      %32 = vector.load %arg4[%c0_18, %c0_19] : memref<1x192xf32, #tpu.memory_space<vmem>>, vector<1x192xf32>
      %33 = vector.broadcast %32 : vector<1x192xf32> to vector<128x192xf32>
      %34 = arith.addf %31, %33 : vector<128x192xf32>
      %c0_20 = arith.constant 0 : index
      %c0_21 = arith.constant 0 : index
      %35 = vector.load %arg7[%c0_20, %c0_21] : memref<128x192xf32, #tpu.memory_space<vmem>>, vector<128x192xf32>
      tpu.vector_store %arg7[%c0_20, %c0_21], %34 {strides = array<i32>} : memref<128x192xf32, #tpu.memory_space<vmem>>, vector<128x192xf32>,
    } else {
    }
    %c64_i32 = arith.constant 64 : i32
    %3 = arith.muli %arg1, %c64_i32 : i32
    %4 = tpu.assume_multiple %3, 64 : i32
    %5 = arith.index_cast %4 : i32 to index
    %c0 = arith.constant 0 : index
    %6 = vector.load %arg7[%5, %c0] : memref<128x192xf32, #tpu.memory_space<vmem>>, vector<64x192xf32>
    %7 = vector.extract_strided_slice %6 {offsets = [0, 0], sizes = [64, 64], strides = [1, 1]} : vector<64x192xf32> to vector<64x64xf32>
    %c0_1 = arith.constant 0 : index
    %c64 = arith.constant 64 : index
    %8 = vector.load %arg7[%c0_1, %c64] : memref<128x192xf32, #tpu.memory_space<vmem>>, vector<128x64xf32>
    %c0_2 = arith.constant 0 : index
    %c128 = arith.constant 128 : index
    %9 = vector.load %arg7[%c0_2, %c128] : memref<128x192xf32, #tpu.memory_space<vmem>>, vector<128x64xf32>
    %cst = arith.constant dense<0.000000e+00> : vector<64x128xf32>
    %10 = tpu.matmul %7, %8, %cst {dimension_numbers = #tpu.dot_dimension_numbers<[1], [1], [0], [0], [0, 0, 1, 0], [], []>} : vector<64x64xf32>, vector<128x64xf32>, vector<64x128xf32> -> vector<64x128xf32>
    %cst_3 = arith.constant dense<0xFF800000> : vector<64xf32>
    %11 = vector.multi_reduction <maximumf>, %10, %cst_3 [1] : vector<64x128xf32> to vector<64xf32>
    %12 = vector.shape_cast %11 : vector<64xf32> to vector<64x1xf32>
    %13 = vector.broadcast %12 : vector<64x1xf32> to vector<64x128xf32>
    %14 = arith.subf %10, %13 : vector<64x128xf32>
    %15 = math.exp %14 : vector<64x128xf32>
    %cst_4 = arith.constant dense<0.000000e+00> : vector<64xf32>
    %16 = vector.multi_reduction <add>, %15, %cst_4 [1] : vector<64x128xf32> to vector<64xf32>
    %17 = vector.shape_cast %16 : vector<64xf32> to vector<64x1xf32>
    %18 = tpu.reciprocal %17 {approx = true} : vector<64x1xf32> -> vector<64x1xf32>
    %19 = vector.broadcast %18 : vector<64x1xf32> to vector<64x128xf32>
    %20 = arith.mulf %15, %19 : vector<64x128xf32>
    %cst_5 = arith.constant dense<0.000000e+00> : vector<64x64xf32>
    %21 = tpu.matmul %20, %9, %cst_5 {dimension_numbers = #tpu.dot_dimension_numbers<[1], [0], [0], [1], [0, 0, 1, 1], [], []>} : vector<64x128xf32>, vector<128x64xf32>, vector<64x64xf32> -> vector<64x64xf32>
    %c0_6 = arith.constant 0 : index
    %c0_7 = arith.constant 0 : index
    %c0_8 = arith.constant 0 : index
    %22 = vector.load %arg5[%c0_6, %c0_7, %c0_8] : memref<1x64x64xf32, #tpu.memory_space<vmem>>, vector<1x64x64xf32>
    %23 = vector.shape_cast %22 : vector<1x64x64xf32> to vector<64x64xf32>
    %24 = vector.shape_cast %21 : vector<64x64xf32> to vector<1x64x64xf32>
    tpu.vector_store %arg5[%c0_6, %c0_7, %c0_8], %24 {strides = array<i32>} : memref<1x64x64xf32, #tpu.memory_space<vmem>>, vector<1x64x64xf32>,
    %c0_9 = arith.constant 0 : index
    %c0_10 = arith.constant 0 : index
    %c0_11 = arith.constant 0 : index
    %25 = vector.load %arg6[%c0_9, %c0_10, %c0_11] : memref<1x64x128xf32, #tpu.memory_space<vmem>>, vector<1x64x128xf32>
    %26 = vector.shape_cast %25 : vector<1x64x128xf32> to vector<64x128xf32>
    %27 = vector.shape_cast %20 : vector<64x128xf32> to vector<1x64x128xf32>
    tpu.vector_store %arg6[%c0_9, %c0_10, %c0_11], %27 {strides = array<i32>} : memref<1x64x128xf32, #tpu.memory_space<vmem>>, vector<1x64x128xf32>,
    return
  }
  func.func @transform_0(%arg0: i32, %arg1: i32) -> (i32, i32, i32) {
    %c0_i32 = arith.constant 0 : i32
    %c0_i32_0 = arith.constant 0 : i32
    %c0_i32_1 = arith.constant 0 : i32
    return %arg0, %c0_i32, %c0_i32_0 : i32, i32, i32
  }
  func.func @transform_1(%arg0: i32, %arg1: i32) -> (i32, i32) {
    %c0_i32 = arith.constant 0 : i32
    %c0_i32_0 = arith.constant 0 : i32
    %c0_i32_1 = arith.constant 0 : i32
    return %c0_i32, %c0_i32_0 : i32, i32
  }
  func.func @transform_2(%arg0: i32, %arg1: i32) -> (i32, i32) {
    %c0_i32 = arith.constant 0 : i32
    %c0_i32_0 = arith.constant 0 : i32
    %c0_i32_1 = arith.constant 0 : i32
    return %c0_i32, %c0_i32_0 : i32, i32
  }
  func.func @transform_3(%arg0: i32, %arg1: i32) -> (i32, i32, i32) {
    %c0_i32 = arith.constant 0 : i32
    %c0_i32_0 = arith.constant 0 : i32
    return %arg0, %arg1, %c0_i32 : i32, i32, i32
  }
  func.func @transform_4(%arg0: i32, %arg1: i32) -> (i32, i32, i32) {
    %c0_i32 = arith.constant 0 : i32
    %c0_i32_0 = arith.constant 0 : i32
    return %arg0, %arg1, %c0_i32 : i32, i32, i32
  }
}

</mosaic_0001>

<bundles_post_ra>
// kernel: tpu_custom_call.1
= control target key start
LH: loop header
LB: loop body
LE: loop exit
PB: predicated region body
PF: predicated region fallthrough
CT: control target
= control target key end

     0   :  { %10 = vsyncpa [#allocation4], 0  ;;  %s3509_s0 = inlined_call_operand.vmem [shape: f32[2,128,768], index: 0, kind: input, shape index: {}]   ;;  %s3510_s1 = inlined_call_operand.vmem [shape: f32[768,192], index: 1, kind: input, shape index: {}]   ;;  %s3511_s2 = inlined_call_operand.vmem [shape: f32[1,192], index: 2, kind: input, shape index: {}]   ;;  %s3512_s3 = inlined_call_operand.vmem [shape: f32[2,128,64], index: 3, kind: output, shape index: {0}]   ;;  %s3513_s4 = inlined_call_operand.hbm [shape: f32[2,128,128], index: 4, kind: output, shape index: {1}]  }
   0x1   :  { %12 = vsyncpa [#allocation4 + $0x1], 0  ;;  %s2153_s15 = smov 0   ;;  %s2155_s16 = smov 0  }
   0x2   :  { %s2157_s17 = smov 0   ;;  %s2159_s18 = smov 0  }
   0x3   :  { %s2161_s19 = smov 0   ;;  %s2163_s20 = smov 0  }
   0x4   :  { %s2165_s21 = smov 0   ;;  %s2167_s22 = smov 0  }
   0x5 LB: > { %3519 = sst [smem:[#allocation6_spill]] %s2115_s20  ;;  %s1813_s23 = sadd.s32 4294967295, %s2123_s22   ;;  %s2123_s22 = sphi %s2167_s22, %s18_s22   ;;  %s2119_s21 = sphi %s2165_s21, %s3529_s21   ;;  %s2115_s20 = sphi %s2163_s20, %s3528_s20   ;;  %s2111_s19 = sphi %s2161_s19, %s3527_s19   ;;  %s2107_s18 = sphi %s2159_s18, %s3526_s18   ;;  %s2103_s17 = sphi %s2157_s17, %s3532_s17   ;;  %s2099_s16 = sphi %s2155_s16, %s3531_s16   ;;  %s2095_s15 = sphi %s2153_s15, %s3530_s15  }
   0x6   : > { %3520 = sst [smem:[#allocation7_spill]] %s2119_s21  ;;  %s1814_s24 = sadd.s32 4294967294, %s2123_s22  }
   0x7   : > { %s27_s25 = sadd.s32 1, %s2115_s20  ;;  %s30_s26 = sadd.s32 1, %s2119_s21 }
   0x8   : > { %p28_p0 = scmp.ge.s32.totalorder %s27_s25, 2  ;;  %p145_p1 = scmp.ne.s32.totalorder %s2103_s17, %s2099_s16 }
   0x9   : > { %p146_p2 = scmp.eq.s32.totalorder %s1813_s23, 3  ;;  %p151_p5 = scmp.ne.s32.totalorder %s2099_s16, %s2095_s15 }
   0xa   : > { %s3534_s25 = smov (%p28_p0, %s27_s25), 0  ;;  %s3536_s26 = smov (!%p28_p0, %s30_s26), %s2119_s21 }
   0xb   : > { %3521 = sst [smem:[#allocation8_spill]] %s3534_s25  ;;  %s131_s27 = ssub.s32 %s2115_s20, %s3534_s25 }
   0xc   : > { %p2204_p3 = por %p146_p2, %p145_p1  ;;  %p32_p4 = scmp.ge.s32.totalorder %s3536_s26, 2 }
   0xd   : > { %p152_p6 = scmp.eq.s32.totalorder %s1814_s24, 3  ;;  %p1817_p7 = scmp.ge.s32.totalorder %s2123_s22, 1 }
   0xe   : > { %s3538_s26 = smov (%p32_p4, %s3536_s26), 0  ;;  %p184_p9 = scmp.lt.s32.totalorder %s2123_s22, 5 }
   0xf   : > { %3523 = sst [smem:[#allocation9_spill]] %s3538_s26  ;;  %p2213_p8 = por %p152_p6, %p151_p5 }
  0x10   : > { %s130_s30 = ssub.s32 %s2119_s21, %s3538_s26  ;;  %s135_s5 = sadd.s32 1, %s2103_s17 }
  0x11   : > { %s132_s6 = sor.u32 %s131_s27, %s130_s30  ;;  %p185_p10 = pnand %p1817_p7, %p184_p9 }
  0x12   : > { %p133_p11 = scmp.eq.s32.totalorder %s132_s6, 0  ;;  %s3515_s8 = sand.u32 (!%p185_p10), 1, %s2099_s16  }
  0x13   : > { %188 = sbr.rel (%p185_p10) target bundleno = 1323 (0x52b), region = 32  ;;  %p219_p12 = scmp.lt.s32.totalorder (!%p185_p10), %s2111_s19, 1 }
  0x14   : > { %s2222_s7 = scalar_select %p133_p11, %s2103_s17, %s135_s5  }
  0x15   : > { %s1818_s9 = sshll.u32 (!%p185_p10), %s3515_s8, 6  ;;  %s2229_s10 = sshll.u32 (!%p185_p10), %s2107_s18, 3 }
  0x16   : > { %p227_p13 = scmp.lt.s32.totalorder (!%p185_p10), %s2229_s10, 15  ;;  %s2244_s25 = scalar_lea.vmem (!%p185_p10), [#allocation3], %s1818_s9 }
  0x17   : > { %p1823_p0 = scmp.ne.s32.totalorder (!%p185_p10), %s2107_s18, 0 }
  0x18   : > { %s220_s11 = scalar_select %p219_p12, %s2111_s19, 1 }
  0x19   : > { %s228_s12 = scalar_select %p227_p13, %s2229_s10, 15 }
  0x1a   : > { %s1890_s13 = smul.u32 768, %s220_s11  ;;  %s1821_s14 = sshll.u32 %s220_s11, 4 }
  0x1b   : > { %s230_s23 = sadd.s32 %s1821_s14, %s228_s12  ;;  %238 = sbr.rel (%p1823_p0) target bundleno = 579 (0x243), region = 36 }
  0x1c   : > { %s2237_s30 = scalar_lea.vmem %s3509_s0, %s1890_s13  ;;  %s1822_s5 = sshll.u32 %s230_s23, 3 }
  0x1d   : > { %s2242_s8 = scalar_lea.vmem %s3512_s3, %s1822_s5 }
  0x20   : > { %v365_v0 = vld [vmem:[%s3510_s1 + $0xf0] sm:$0xff]  ;;  %v363_v2 = vld [vmem:[%s3510_s1 + $0xe0] sm:$0xff]  ;;  %vm1314_vm0 = vcmask 523264  }
  0x21   : > { %v429_v1 = vld [vmem:[%s3510_s1 + $0x2f0] sm:$0xff]  ;;  %533 = vmatpush.msra.mxu0 %v365_v0  ;;  %v427_v4 = vld [vmem:[%s3510_s1 + $0x2e0] sm:$0xff]  ;;  %v366_v0 = vld [vmem:[%s3510_s1 + $0xf8] sm:$0xff] }
  0x22   : > { %663 = vmatpush.msra.mxu2 %v429_v1  ;;  %v397_v3 = vld [vmem:[%s3510_s1 + $0x1f0] sm:$0xff]  ;;  %v395_v7 = vld [vmem:[%s3510_s1 + $0x1e0] sm:$0xff] }
  0x23   : > { %v461_v5 = vld [vmem:[%s3510_s1 + $0x3f0] sm:$0xff]  ;;  %598 = vmatpush.msra.mxu1 %v397_v3  ;;  %534 = vmatpush.msra.mxu0 %v363_v2  ;;  %v459_v9 = vld [vmem:[%s3510_s1 + $0x3e0] sm:$0xff]  ;;  %v2447_v3 = vld [vmem:[%s2237_s30 + $0x8] sm:$0xff] }
  0x24   : > { %728 = vmatpush.msra.mxu3 %v461_v5  ;;  %v361_v6 = vld [vmem:[%s3510_s1 + $0xd0] sm:$0xff]  ;;  %664 = vmatpush.msra.mxu2 %v427_v4  ;;  %v359_v11 = vld [vmem:[%s3510_s1 + $0xc0] sm:$0xff]  ;;  %v242_v4 = vld [vmem:[%s2237_s30 + $0x18] sm:$0xff] }
  0x25   : > { %v425_v8 = vld [vmem:[%s3510_s1 + $0x2d0] sm:$0xff]  ;;  %599 = vmatpush.msra.mxu1 %v395_v7  ;;  %v423_v12 = vld [vmem:[%s3510_s1 + $0x2c0] sm:$0xff]  ;;  %535 = vmatpush.msra.mxu0 %v361_v6  ;;  %v398_v6 = vld [vmem:[%s3510_s1 + $0x1f8] sm:$0xff] }
  0x26   : > { %v393_v10 = vld [vmem:[%s3510_s1 + $0x1d0] sm:$0xff]  ;;  %729 = vmatpush.msra.mxu3 %v459_v9  ;;  %665 = vmatpush.msra.mxu2 %v425_v8  ;;  %v391_v14 = vld [vmem:[%s3510_s1 + $0x1c0] sm:$0xff]  ;;  %v364_v8 = vld [vmem:[%s3510_s1 + $0xe8] sm:$0xff] }
  0x27   : > { %v457_v13 = vld [vmem:[%s3510_s1 + $0x3d0] sm:$0xff]  ;;  %v455_v15 = vld [vmem:[%s3510_s1 + $0x3c0] sm:$0xff]  ;;  %600 = vmatpush.msra.mxu1 %v393_v10  ;;  %536 = vmatpush.msra.mxu0 %v359_v11  ;;  %v396_v10 = vld [vmem:[%s3510_s1 + $0x1e8] sm:$0xff] }
  0x28   : > { %730 = vmatpush.msra.mxu3 %v457_v13  ;;  %v357_v16 = vld [vmem:[%s3510_s1 + $0xb0] sm:$0xff]  ;;  %666 = vmatpush.msra.mxu2 %v423_v12  ;;  %v355_v20 = vld [vmem:[%s3510_s1 + $0xa0] sm:$0xff]  ;;  %v362_v12 = vld [vmem:[%s3510_s1 + $0xd8] sm:$0xff] }
  0x29   : > { %v421_v17 = vld [vmem:[%s3510_s1 + $0x2b0] sm:$0xff]  ;;  %601 = vmatpush.msra.mxu1 %v391_v14  ;;  %v419_v21 = vld [vmem:[%s3510_s1 + $0x2a0] sm:$0xff]  ;;  %537 = vmatpush.msra.mxu0 %v357_v16  ;;  %v394_v16 = vld [vmem:[%s3510_s1 + $0x1d8] sm:$0xff] }
  0x2a   : > { %v389_v18 = vld [vmem:[%s3510_s1 + $0x1b0] sm:$0xff]  ;;  %731 = vmatpush.msra.mxu3 %v455_v15  ;;  %667 = vmatpush.msra.mxu2 %v421_v17  ;;  %v387_v22 = vld [vmem:[%s3510_s1 + $0x1a0] sm:$0xff] }
  0x2b   : > { %v453_v19 = vld [vmem:[%s3510_s1 + $0x3b0] sm:$0xff]  ;;  %v451_v23 = vld [vmem:[%s3510_s1 + $0x3a0] sm:$0xff]  ;;  %602 = vmatpush.msra.mxu1 %v389_v18  ;;  %538 = vmatpush.msra.mxu0 %v355_v20  ;;  %v2490_v18 = vld [vmem:[%s2237_s30 + $0x38] sm:$0xff] }
  0x2c   : > { %732 = vmatpush.msra.mxu3 %v453_v19  ;;  %v353_v24 = vld [vmem:[%s3510_s1 + $0x90] sm:$0xff]  ;;  %668 = vmatpush.msra.mxu2 %v419_v21  ;;  %v351_v28 = vld [vmem:[%s3510_s1 + $0x80] sm:$0xff]  ;;  %v360_v19 = vld [vmem:[%s3510_s1 + $0xc8] sm:$0xff] }
  0x2d   : > { %v417_v25 = vld [vmem:[%s3510_s1 + $0x290] sm:$0xff]  ;;  %603 = vmatpush.msra.mxu1 %v387_v22  ;;  %v415_v29 = vld [vmem:[%s3510_s1 + $0x280] sm:$0xff]  ;;  %539 = vmatpush.msra.mxu0 %v353_v24  ;;  %v248_v20 = vld [vmem:[%s2237_s30 + $0x48] sm:$0xff] }
  0x2e   : > { %v385_v26 = vld [vmem:[%s3510_s1 + $0x190] sm:$0xff]  ;;  %733 = vmatpush.msra.mxu3 %v451_v23  ;;  %669 = vmatpush.msra.mxu2 %v417_v25  ;;  %v383_v30 = vld [vmem:[%s3510_s1 + $0x180] sm:$0xff]  ;;  %v392_v22 = vld [vmem:[%s3510_s1 + $0x1c8] sm:$0xff] }
  0x2f   : > { %v449_v27 = vld [vmem:[%s3510_s1 + $0x390] sm:$0xff]  ;;  %v447_v31 = vld [vmem:[%s3510_s1 + $0x380] sm:$0xff]  ;;  %604 = vmatpush.msra.mxu1 %v385_v26  ;;  %540 = vmatpush.msra.mxu0 %v351_v28  ;;  %v358_v24 = vld [vmem:[%s3510_s1 + $0xb8] sm:$0xff] }
  0x30   : > { %734 = vmatpush.msra.mxu3 %v449_v27  ;;  %v349_v32 = vld [vmem:[%s3510_s1 + $0x70] sm:$0xff]  ;;  %670 = vmatpush.msra.mxu2 %v415_v29  ;;  %v347_v36 = vld [vmem:[%s3510_s1 + $0x60] sm:$0xff]  ;;  %v390_v26 = vld [vmem:[%s3510_s1 + $0x1b8] sm:$0xff] }
  0x31   : > { %v413_v33 = vld [vmem:[%s3510_s1 + $0x270] sm:$0xff]  ;;  %605 = vmatpush.msra.mxu1 %v383_v30  ;;  %v411_v37 = vld [vmem:[%s3510_s1 + $0x260] sm:$0xff]  ;;  %541 = vmatpush.msra.mxu0 %v349_v32  ;;  %v356_v28 = vld [vmem:[%s3510_s1 + $0xa8] sm:$0xff] }
  0x32   : > { %v381_v34 = vld [vmem:[%s3510_s1 + $0x170] sm:$0xff]  ;;  %735 = vmatpush.msra.mxu3 %v447_v31  ;;  %671 = vmatpush.msra.mxu2 %v413_v33  ;;  %v379_v38 = vld [vmem:[%s3510_s1 + $0x160] sm:$0xff]  ;;  %v388_v32 = vld [vmem:[%s3510_s1 + $0x1a8] sm:$0xff] }
  0x33   : > { %v445_v35 = vld [vmem:[%s3510_s1 + $0x370] sm:$0xff]  ;;  %v443_v39 = vld [vmem:[%s3510_s1 + $0x360] sm:$0xff]  ;;  %606 = vmatpush.msra.mxu1 %v381_v34  ;;  %542 = vmatpush.msra.mxu0 %v347_v36  ;;  %v2536_v34 = vld [vmem:[%s2237_s30 + $0x68] sm:$0xff] }
  0x34   : > { %736 = vmatpush.msra.mxu3 %v445_v35  ;;  %v345_v40 = vld [vmem:[%s3510_s1 + $0x50] sm:$0xff]  ;;  %672 = vmatpush.msra.mxu2 %v411_v37  ;;  %v343_v44 = vld [vmem:[%s3510_s1 + $0x40] sm:$0xff]  ;;  %v254_v35 = vld [vmem:[%s2237_s30 + $0x78] sm:$0xff] }
  0x35   : > { %v409_v41 = vld [vmem:[%s3510_s1 + $0x250] sm:$0xff]  ;;  %607 = vmatpush.msra.mxu1 %v379_v38  ;;  %v407_v45 = vld [vmem:[%s3510_s1 + $0x240] sm:$0xff]  ;;  %543 = vmatpush.msra.mxu0 %v345_v40  ;;  %v354_v36 = vld [vmem:[%s3510_s1 + $0x98] sm:$0xff] }
  0x36   : > { %v377_v42 = vld [vmem:[%s3510_s1 + $0x150] sm:$0xff]  ;;  %737 = vmatpush.msra.mxu3 %v443_v39  ;;  %673 = vmatpush.msra.mxu2 %v409_v41  ;;  %v375_v46 = vld [vmem:[%s3510_s1 + $0x140] sm:$0xff]  ;;  %v386_v38 = vld [vmem:[%s3510_s1 + $0x198] sm:$0xff] }
  0x37   : > { %v441_v43 = vld [vmem:[%s3510_s1 + $0x350] sm:$0xff]  ;;  %v439_v47 = vld [vmem:[%s3510_s1 + $0x340] sm:$0xff]  ;;  %608 = vmatpush.msra.mxu1 %v377_v42  ;;  %544 = vmatpush.msra.mxu0 %v343_v44  ;;  %v2558_v42 = vld [vmem:[%s2237_s30 + $0x98] sm:$0xff] }
  0x38   : > { %738 = vmatpush.msra.mxu3 %v441_v43  ;;  %v341_v48 = vld [vmem:[%s3510_s1 + $0x30] sm:$0xff]  ;;  %674 = vmatpush.msra.mxu2 %v407_v45  ;;  %v339_v52 = vld [vmem:[%s3510_s1 + $0x20] sm:$0xff]  ;;  %v260_v43 = vld [vmem:[%s2237_s30 + $0xa8] sm:$0xff] }
  0x39   : > { %v405_v49 = vld [vmem:[%s3510_s1 + $0x230] sm:$0xff]  ;;  %609 = vmatpush.msra.mxu1 %v375_v46  ;;  %v403_v53 = vld [vmem:[%s3510_s1 + $0x220] sm:$0xff]  ;;  %545 = vmatpush.msra.mxu0 %v341_v48  ;;  %v352_v44 = vld [vmem:[%s3510_s1 + $0x88] sm:$0xff] }
  0x3a   : > { %v373_v50 = vld [vmem:[%s3510_s1 + $0x130] sm:$0xff]  ;;  %739 = vmatpush.msra.mxu3 %v439_v47  ;;  %675 = vmatpush.msra.mxu2 %v405_v49  ;;  %v371_v54 = vld [vmem:[%s3510_s1 + $0x120] sm:$0xff]  ;;  %v384_v46 = vld [vmem:[%s3510_s1 + $0x188] sm:$0xff] }
  0x3b   : > { %v437_v51 = vld [vmem:[%s3510_s1 + $0x330] sm:$0xff]  ;;  %v435_v55 = vld [vmem:[%s3510_s1 + $0x320] sm:$0xff]  ;;  %610 = vmatpush.msra.mxu1 %v373_v50  ;;  %546 = vmatpush.msra.mxu0 %v339_v52  ;;  %v2580_v50 = vld [vmem:[%s2237_s30 + $0xc8] sm:$0xff] }
  0x3c   : > { %740 = vmatpush.msra.mxu3 %v437_v51  ;;  %v337_v56 = vld [vmem:[%s3510_s1 + $0x10] sm:$0xff]  ;;  %676 = vmatpush.msra.mxu2 %v403_v53  ;;  %v335_v60 = vld [vmem:[%s3510_s1] sm:$0xff]  ;;  %v266_v51 = vld [vmem:[%s2237_s30 + $0xd8] sm:$0xff] }
  0x3d   : > { %v401_v57 = vld [vmem:[%s3510_s1 + $0x210] sm:$0xff]  ;;  %611 = vmatpush.msra.mxu1 %v371_v54  ;;  %v399_v61 = vld [vmem:[%s3510_s1 + $0x200] sm:$0xff]  ;;  %547 = vmatpush.msra.mxu0 %v337_v56  ;;  %v350_v52 = vld [vmem:[%s3510_s1 + $0x78] sm:$0xff] }
  0x3e   : > { %v369_v58 = vld [vmem:[%s3510_s1 + $0x110] sm:$0xff]  ;;  %741 = vmatpush.msra.mxu3 %v435_v55  ;;  %677 = vmatpush.msra.mxu2 %v401_v57  ;;  %v2434_v62 = vld [vmem:[%s2237_s30] sm:$0xff]  ;;  %v382_v54 = vld [vmem:[%s3510_s1 + $0x178] sm:$0xff] }
  0x3f   : > { %v433_v59 = vld [vmem:[%s3510_s1 + $0x310] sm:$0xff]  ;;  %612 = vmatpush.msra.mxu1 %v369_v58  ;;  %v367_v1 = vld [vmem:[%s3510_s1 + $0x100] sm:$0xff]  ;;  %548 = vmatpush.msra.mxu0 %v335_v60  ;;  %v2602_v58 = vld [vmem:[%s2237_s30 + $0xf8] sm:$0xff] }
  0x40   : > { %v241_v63 = vld [vmem:[%s2237_s30 + $0x10] sm:$0xff]  ;;  %742 = vmatpush.msra.mxu3 %v433_v59  ;;  %678 = vmatpush.msra.mxu2 %v399_v61  ;;  %v431_v2 = vld [vmem:[%s3510_s1 + $0x300] sm:$0xff]  ;;  %v272_v59 = vld [vmem:[%s2237_s30 + $0x108] sm:$0xff] }
  0x41   : > { %549 = vmatmul.f32.vlgmr.msra.gmra.mxu0 %v2434_v62  ;;  %679 = vmatmul.f32.vlgmr.msra.gmra.mxu2 %v241_v63  ;;  %v493_v5 = vld [vmem:[%s3510_s1 + $0x4f0] sm:$0xff]  ;;  %v491_v9 = vld [vmem:[%s3510_s1 + $0x4e0] sm:$0xff]  ;;  %v348_v60 = vld [vmem:[%s3510_s1 + $0x68] sm:$0xff] }
  0x42   : > { %923 = vmatpush.msrb.mxu2 %v366_v0  ;;  %613 = vmatpush.msra.mxu1 %v367_v1  ;;  %v525_v7 = vld [vmem:[%s3510_s1 + $0x5f0] sm:$0xff]  ;;  %v523_v11 = vld [vmem:[%s3510_s1 + $0x5e0] sm:$0xff]  ;;  %v380_v63 = vld [vmem:[%s3510_s1 + $0x168] sm:$0xff] }
  0x43   : > { %743 = vmatpush.msra.mxu3 %v431_v2  ;;  %614 = vmatmul.f32.vlgmr.msra.gmra.mxu1 %v2447_v3  ;;  %v489_v13 = vld [vmem:[%s3510_s1 + $0x4d0] sm:$0xff]  ;;  %v247_v15 = vld [vmem:[%s2237_s30 + $0x40] sm:$0xff] }
  0x44   : > { %744 = vmatmul.f32.vlgmr.msra.gmra.mxu3 %v242_v4  ;;  %793 = vmatpush.msrb.mxu0 %v493_v5  ;;  %v2480_v14 = vld [vmem:[%s2237_s30 + $0x30] sm:$0xff]  ;;  %v487_v21 = vld [vmem:[%s3510_s1 + $0x4c0] sm:$0xff]  ;;  %v2624_v4 = vld [vmem:[%s2237_s30 + $0x128] sm:$0xff] }
  0x45   : > { %988 = vmatpush.msrb.mxu3 %v398_v6  ;;  %858 = vmatpush.msrb.mxu1 %v525_v7  ;;  %v521_v17 = vld [vmem:[%s3510_s1 + $0x5d0] sm:$0xff]  ;;  %v519_v23 = vld [vmem:[%s3510_s1 + $0x5c0] sm:$0xff]  ;;  %v278_v5 = vld [vmem:[%s2237_s30 + $0x138] sm:$0xff] }
  0x46   : > { %924 = vmatpush.msrb.mxu2 %v364_v8  ;;  %794 = vmatpush.msrb.mxu0 %v491_v9  ;;  %v485_v25 = vld [vmem:[%s3510_s1 + $0x4b0] sm:$0xff]  ;;  %v483_v29 = vld [vmem:[%s3510_s1 + $0x4a0] sm:$0xff]  ;;  %v346_v6 = vld [vmem:[%s3510_s1 + $0x58] sm:$0xff] }
  0x47   : > { %989 = vmatpush.msrb.mxu3 %v396_v10  ;;  %859 = vmatpush.msrb.mxu1 %v523_v11  ;;  %v517_v27 = vld [vmem:[%s3510_s1 + $0x5b0] sm:$0xff]  ;;  %v2526_v30 = vld [vmem:[%s2237_s30 + $0x60] sm:$0xff]  ;;  %v378_v8 = vld [vmem:[%s3510_s1 + $0x158] sm:$0xff] }
  0x48   : > { %925 = vmatpush.msrb.mxu2 %v362_v12  ;;  %795 = vmatpush.msrb.mxu0 %v489_v13  ;;  %v253_v31 = vld [vmem:[%s2237_s30 + $0x70] sm:$0xff]  ;;  %v515_v33 = vld [vmem:[%s3510_s1 + $0x5a0] sm:$0xff]  ;;  %v2646_v12 = vld [vmem:[%s2237_s30 + $0x158] sm:$0xff] }
  0x49   : > { %552 = vmatmul.f32.gmra.mxu0 %v2480_v14  ;;  %682 = vmatmul.f32.gmra.mxu2 %v247_v15  ;;  %v481_v37 = vld [vmem:[%s3510_s1 + $0x490] sm:$0xff]  ;;  %v259_v41 = vld [vmem:[%s2237_s30 + $0xa0] sm:$0xff]  ;;  %v284_v13 = vld [vmem:[%s2237_s30 + $0x168] sm:$0xff] }
  0x4a   : > { %990 = vmatpush.msrb.mxu3 %v394_v16  ;;  %860 = vmatpush.msrb.mxu1 %v521_v17  ;;  %v513_v39 = vld [vmem:[%s3510_s1 + $0x590] sm:$0xff]  ;;  %v479_v45 = vld [vmem:[%s3510_s1 + $0x480] sm:$0xff]  ;;  %v344_v15 = vld [vmem:[%s3510_s1 + $0x48] sm:$0xff] }
  0x4b   : > { %617 = vmatmul.f32.gmra.mxu1 %v2490_v18  ;;  %926 = vmatpush.msrb.mxu2 %v360_v19  ;;  %v2554_v40 = vld [vmem:[%s2237_s30 + $0x90] sm:$0xff]  ;;  %v511_v47 = vld [vmem:[%s3510_s1 + $0x580] sm:$0xff]  ;;  %v376_v17 = vld [vmem:[%s3510_s1 + $0x148] sm:$0xff] }
  0x4c   : > { %747 = vmatmul.f32.gmra.mxu3 %v248_v20  ;;  %796 = vmatpush.msrb.mxu0 %v487_v21  ;;  %v2576_v48 = vld [vmem:[%s2237_s30 + $0xc0] sm:$0xff]  ;;  %v265_v49 = vld [vmem:[%s2237_s30 + $0xd0] sm:$0xff] }
  0x4d   : > { %991 = vmatpush.msrb.mxu3 %v392_v22  ;;  %861 = vmatpush.msrb.mxu1 %v519_v23  ;;  %v477_v53 = vld [vmem:[%s3510_s1 + $0x470] sm:$0xff]  ;;  %v271_v57 = vld [vmem:[%s2237_s30 + $0x100] sm:$0xff]  ;;  %v2668_v22 = vld [vmem:[%s2237_s30 + $0x188] sm:$0xff] }
  0x4e   : > { %927 = vmatpush.msrb.mxu2 %v358_v24  ;;  %797 = vmatpush.msrb.mxu0 %v485_v25  ;;  %v509_v55 = vld [vmem:[%s3510_s1 + $0x570] sm:$0xff]  ;;  %v475_v61 = vld [vmem:[%s3510_s1 + $0x460] sm:$0xff]  ;;  %v290_v23 = vld [vmem:[%s2237_s30 + $0x198] sm:$0xff] }
  0x4f   : > { %992 = vmatpush.msrb.mxu3 %v390_v26  ;;  %862 = vmatpush.msrb.mxu1 %v517_v27  ;;  %v2598_v56 = vld [vmem:[%s2237_s30 + $0xf0] sm:$0xff]  ;;  %v507_v0 = vld [vmem:[%s3510_s1 + $0x560] sm:$0xff]  ;;  %v342_v24 = vld [vmem:[%s3510_s1 + $0x38] sm:$0xff] }
  0x50   : > { %928 = vmatpush.msrb.mxu2 %v356_v28  ;;  %798 = vmatpush.msrb.mxu0 %v483_v29  ;;  %v2620_v1 = vld [vmem:[%s2237_s30 + $0x120] sm:$0xff]  ;;  %v277_v2 = vld [vmem:[%s2237_s30 + $0x130] sm:$0xff]  ;;  %v374_v26 = vld [vmem:[%s3510_s1 + $0x138] sm:$0xff] }
  0x51   : > { %555 = vmatmul.f32.gmra.mxu0 %v2526_v30  ;;  %685 = vmatmul.f32.gmra.mxu2 %v253_v31  ;;  %v473_v7 = vld [vmem:[%s3510_s1 + $0x450] sm:$0xff]  ;;  %v283_v11 = vld [vmem:[%s2237_s30 + $0x160] sm:$0xff]  ;;  %v2690_v31 = vld [vmem:[%s2237_s30 + $0x1b8] sm:$0xff] }
  0x52   : > { %993 = vmatpush.msrb.mxu3 %v388_v32  ;;  %863 = vmatpush.msrb.mxu1 %v515_v33  ;;  %v505_v9 = vld [vmem:[%s3510_s1 + $0x550] sm:$0xff]  ;;  %v471_v16 = vld [vmem:[%s3510_s1 + $0x440] sm:$0xff]  ;;  %v296_v32 = vld [vmem:[%s2237_s30 + $0x1c8] sm:$0xff] }
  0x53   : > { %620 = vmatmul.f32.gmra.mxu1 %v2536_v34  ;;  %929 = vmatpush.msrb.mxu2 %v354_v36  ;;  %v2642_v10 = vld [vmem:[%s2237_s30 + $0x150] sm:$0xff]  ;;  %v503_v19 = vld [vmem:[%s3510_s1 + $0x540] sm:$0xff]  ;;  %v340_v33 = vld [vmem:[%s3510_s1 + $0x28] sm:$0xff] }
  0x54   : > { %750 = vmatmul.f32.gmra.mxu3 %v254_v35  ;;  %799 = vmatpush.msrb.mxu0 %v481_v37  ;;  %v2664_v20 = vld [vmem:[%s2237_s30 + $0x180] sm:$0xff]  ;;  %v289_v21 = vld [vmem:[%s2237_s30 + $0x190] sm:$0xff]  ;;  %v372_v36 = vld [vmem:[%s3510_s1 + $0x128] sm:$0xff] }
  0x55   : > { %994 = vmatpush.msrb.mxu3 %v386_v38  ;;  %864 = vmatpush.msrb.mxu1 %v513_v39  ;;  %v469_v25 = vld [vmem:[%s3510_s1 + $0x430] sm:$0xff]  ;;  %v295_v29 = vld [vmem:[%s2237_s30 + $0x1c0] sm:$0xff] }
  0x56   : > { %930 = vmatpush.msrb.mxu2 %v352_v44  ;;  %800 = vmatpush.msrb.mxu0 %v479_v45  ;;  %v501_v27 = vld [vmem:[%s3510_s1 + $0x530] sm:$0xff]  ;;  %v467_v35 = vld [vmem:[%s3510_s1 + $0x420] sm:$0xff]  ;;  %v338_v44 = vld [vmem:[%s3510_s1 + $0x18] sm:$0xff] }
  0x57   : > { %995 = vmatpush.msrb.mxu3 %v384_v46  ;;  %865 = vmatpush.msrb.mxu1 %v511_v47  ;;  %v2686_v28 = vld [vmem:[%s2237_s30 + $0x1b0] sm:$0xff]  ;;  %v499_v37 = vld [vmem:[%s3510_s1 + $0x520] sm:$0xff]  ;;  %v370_v46 = vld [vmem:[%s3510_s1 + $0x118] sm:$0xff] }
  0x58   : > { %931 = vmatpush.msrb.mxu2 %v350_v52  ;;  %801 = vmatpush.msrb.mxu0 %v477_v53  ;;  %v2708_v38 = vld [vmem:[%s2237_s30 + $0x1e0] sm:$0xff]  ;;  %v301_v39 = vld [vmem:[%s2237_s30 + $0x1f0] sm:$0xff]  ;;  %v2734_v52 = vld [vmem:[%s2237_s30 + $0x218] sm:$0xff] }
  0x59   : > { %558 = vmatmul.f32.gmra.mxu0 %v2554_v40  ;;  %688 = vmatmul.f32.gmra.mxu2 %v259_v41  ;;  %v2712_v41 = vld [vmem:[%s2237_s30 + $0x1e8] sm:$0xff]  ;;  %v465_v45 = vld [vmem:[%s3510_s1 + $0x410] sm:$0xff] }
  0x5a   : > { %996 = vmatpush.msrb.mxu3 %v382_v54  ;;  %866 = vmatpush.msrb.mxu1 %v509_v55  ;;  %v497_v47 = vld [vmem:[%s3510_s1 + $0x510] sm:$0xff]  ;;  %v308_v53 = vld [vmem:[%s2237_s30 + $0x228] sm:$0xff]  ;;  %v463_v55 = vld [vmem:[%s3510_s1 + $0x400] sm:$0xff] }
  0x5b   : > { %623 = vmatmul.f32.gmra.mxu1 %v2558_v42  ;;  %932 = vmatpush.msrb.mxu2 %v348_v60  ;;  %v336_v54 = vld [vmem:[%s3510_s1 + $0x8] sm:$0xff]  ;;  %v2752_v60 = vld [vmem:[%s2237_s30 + $0x240] sm:$0xff] }
  0x5c   : > { %753 = vmatmul.f32.gmra.mxu3 %v260_v43  ;;  %802 = vmatpush.msrb.mxu0 %v475_v61  ;;  %v302_v43 = vld [vmem:[%s2237_s30 + $0x1f8] sm:$0xff]  ;;  %v313_v61 = vld [vmem:[%s2237_s30 + $0x250] sm:$0xff] }
  0x5d   : > { %997 = vmatpush.msrb.mxu3 %v380_v63  ;;  %867 = vmatpush.msrb.mxu1 %v507_v0  ;;  %v2756_v63 = vld [vmem:[%s2237_s30 + $0x248] sm:$0xff]  ;;  %v314_v0 = vld [vmem:[%s2237_s30 + $0x258] sm:$0xff] }
  0x5e   : > { %933 = vmatpush.msrb.mxu2 %v346_v6  ;;  %803 = vmatpush.msrb.mxu0 %v473_v7  ;;  %v526_v6 = vld [vmem:[%s3510_s1 + $0x5f8] sm:$0xff] }
  0x5f   : > { %998 = vmatpush.msrb.mxu3 %v378_v8  ;;  %868 = vmatpush.msrb.mxu1 %v505_v9  ;;  %v462_v7 = vld [vmem:[%s3510_s1 + $0x3f8] sm:$0xff]  ;;  %v2774_v8 = vld [vmem:[%s2237_s30 + $0x270] sm:$0xff]  ;;  %v319_v9 = vld [vmem:[%s2237_s30 + $0x280] sm:$0xff] }
  0x60   : > { %934 = vmatpush.msrb.mxu2 %v344_v15  ;;  %804 = vmatpush.msrb.mxu0 %v471_v16  ;;  %v492_v15 = vld [vmem:[%s3510_s1 + $0x4e8] sm:$0xff] }
  0x61   : > { %561 = vmatmul.f32.gmra.mxu0 %v2576_v48  ;;  %691 = vmatmul.f32.gmra.mxu2 %v265_v49  ;;  %v2730_v49 = vld [vmem:[%s2237_s30 + $0x210] sm:$0xff]  ;;  %v428_v16 = vld [vmem:[%s3510_s1 + $0x2e8] sm:$0xff] }
  0x62   : > { %999 = vmatpush.msrb.mxu3 %v376_v17  ;;  %869 = vmatpush.msrb.mxu1 %v503_v19  ;;  %v524_v17 = vld [vmem:[%s3510_s1 + $0x5e8] sm:$0xff] }
  0x63   : > { %626 = vmatmul.f32.gmra.mxu1 %v2580_v50  ;;  %935 = vmatpush.msrb.mxu2 %v342_v24  ;;  %v460_v19 = vld [vmem:[%s3510_s1 + $0x3e8] sm:$0xff] }
  0x64   : > { %756 = vmatmul.f32.gmra.mxu3 %v266_v51  ;;  %805 = vmatpush.msrb.mxu0 %v469_v25  ;;  %v307_v51 = vld [vmem:[%s2237_s30 + $0x220] sm:$0xff]  ;;  %v2800_v24 = vld [vmem:[%s2237_s30 + $0x2a8] sm:$0xff]  ;;  %v326_v25 = vld [vmem:[%s2237_s30 + $0x2b8] sm:$0xff] }
  0x65   : > { %1000 = vmatpush.msrb.mxu3 %v374_v26  ;;  %870 = vmatpush.msrb.mxu1 %v501_v27  ;;  %v490_v26 = vld [vmem:[%s3510_s1 + $0x4d8] sm:$0xff] }
  0x66   : > { %936 = vmatpush.msrb.mxu2 %v340_v33  ;;  %806 = vmatpush.msrb.mxu0 %v467_v35  ;;  %v426_v27 = vld [vmem:[%s3510_s1 + $0x2d8] sm:$0xff]  ;;  %v2818_v33 = vld [vmem:[%s2237_s30 + $0x2d0] sm:$0xff]  ;;  %v331_v35 = vld [vmem:[%s2237_s30 + $0x2e0] sm:$0xff] }
  0x67   : > { %1001 = vmatpush.msrb.mxu3 %v372_v36  ;;  %871 = vmatpush.msrb.mxu1 %v499_v37  ;;  %v2822_v36 = vld [vmem:[%s2237_s30 + $0x2d8] sm:$0xff]  ;;  %v2827_v37 = vld [vmem:[%s3511_s2] sm:$0x3] }
  0x68   : > { %937 = vmatpush.msrb.mxu2 %v338_v44  ;;  %807 = vmatpush.msrb.mxu0 %v465_v45  ;;  %v2836_v44 = vperm.slane %v2827_v37, 0  ;;  %v424_v45 = vld [vmem:[%s3510_s1 + $0x2c8] sm:$0xff] }
  0x69   : > { %564 = vmatmul.f32.gmra.mxu0 %v2598_v56  ;;  %694 = vmatmul.f32.gmra.mxu2 %v271_v57  ;;  %v368_v57 = vld [vmem:[%s3510_s1 + $0x108] sm:$0xff] }
  0x6a   : > { %1002 = vmatpush.msrb.mxu3 %v370_v46  ;;  %872 = vmatpush.msrb.mxu1 %v497_v47  ;;  %v520_v46 = vld [vmem:[%s3510_s1 + $0x5c8] sm:$0xff] }
  0x6b   : > { %629 = vmatmul.f32.gmra.mxu1 %v2602_v58  ;;  %938 = vmatpush.msrb.mxu2 %v336_v54  ;;  %v456_v47 = vld [vmem:[%s3510_s1 + $0x3c8] sm:$0xff] }
  0x6c   : > { %759 = vmatmul.f32.gmra.mxu3 %v272_v59  ;;  %v495_v59 = vld [vmem:[%s3510_s1 + $0x500] sm:$0xff]  ;;  %808 = vmatpush.msrb.mxu0 %v463_v55 }
  0x6d   : > { %1003 = vmatpush.msrb.mxu3 %v368_v57  ;;  %873 = vmatpush.msrb.mxu1 %v495_v59  ;;  %v2852_v57 = vld [vmem:[%s2237_s30 + $0x28] sm:$0xff] }
  0x6f   : > { %1248 = vmatpush.msra.mxu3 %v526_v6  ;;  %1118 = vmatpush.msra.mxu1 %v462_v7  ;;  %v454_v6 = vld [vmem:[%s3510_s1 + $0x3b8] sm:$0xff] }
  0x71   : > { %567 = vmatmul.f32.gmra.mxu0 %v2620_v1  ;;  %697 = vmatmul.f32.gmra.mxu2 %v277_v2  ;;  %v494_v2 = vld [vmem:[%s3510_s1 + $0x4f8] sm:$0xff] }
  0x72   : > { %1183 = vmatpush.msra.mxu2 %v494_v2  ;;  %1249 = vmatpush.msra.mxu3 %v524_v17  ;;  %v422_v2 = vld [vmem:[%s3510_s1 + $0x2b8] sm:$0xff] }
  0x73   : > { %632 = vmatmul.f32.gmra.mxu1 %v2624_v4  ;;  %v2877_v17 = vld [vmem:[%s2237_s30 + $0x58] sm:$0xff] }
  0x74   : > { %762 = vmatmul.f32.gmra.mxu3 %v278_v5  ;;  %v430_v5 = vld [vmem:[%s3510_s1 + $0x2f8] sm:$0xff]  ;;  %1184 = vmatpush.msra.mxu2 %v492_v15 }
  0x75   : > { %1053 = vmatpush.msra.mxu0 %v430_v5  ;;  %1119 = vmatpush.msra.mxu1 %v460_v19  ;;  %v518_v5 = vld [vmem:[%s3510_s1 + $0x5b8] sm:$0xff] }
  0x76   : > { %1185 = vmatpush.msra.mxu2 %v490_v26  ;;  %v420_v26 = vld [vmem:[%s3510_s1 + $0x2a8] sm:$0xff] }
  0x77   : > { %1054 = vmatpush.msra.mxu0 %v428_v16 }
  0x79   : > { %570 = vmatmul.f32.gmra.mxu0 %v2642_v10  ;;  %700 = vmatmul.f32.gmra.mxu2 %v283_v11  ;;  %v2778_v11 = vld [vmem:[%s2237_s30 + $0x278] sm:$0xff] }
  0x7a   : > { %1055 = vmatpush.msra.mxu0 %v426_v27  ;;  %v516_v27 = vld [vmem:[%s3510_s1 + $0x5a8] sm:$0xff] }
  0x7b   : > { %635 = vmatmul.f32.gmra.mxu1 %v2646_v12 }
  0x7c   : > { %765 = vmatmul.f32.gmra.mxu3 %v284_v13  ;;  %v320_v13 = vld [vmem:[%s2237_s30 + $0x288] sm:$0xff]  ;;  %1056 = vmatpush.msra.mxu0 %v424_v45 }
  0x7e   : > { %1057 = vmatpush.msra.mxu0 %v422_v2  ;;  %v2921_v2 = vld [vmem:[%s2237_s30 + $0xb0] sm:$0xff] }
  0x80   : > { %1058 = vmatpush.msra.mxu0 %v420_v26 }
  0x81   : > { %573 = vmatmul.f32.gmra.mxu0 %v2664_v20  ;;  %703 = vmatmul.f32.gmra.mxu2 %v289_v21  ;;  %v2796_v21 = vld [vmem:[%s2237_s30 + $0x2a0] sm:$0xff] }
  0x83   : > { %638 = vmatmul.f32.gmra.mxu1 %v2668_v22 }
  0x84   : > { %768 = vmatmul.f32.gmra.mxu3 %v290_v23  ;;  %v325_v23 = vld [vmem:[%s2237_s30 + $0x2b0] sm:$0xff] }
  0x89   : > { %576 = vmatmul.f32.gmra.mxu0 %v2686_v28  ;;  %706 = vmatmul.f32.gmra.mxu2 %v295_v29  ;;  %v522_v29 = vld [vmem:[%s3510_s1 + $0x5d8] sm:$0xff] }
  0x8a   : > { %1250 = vmatpush.msra.mxu3 %v522_v29  ;;  %v452_v29 = vld [vmem:[%s3510_s1 + $0x3a8] sm:$0xff] }
  0x8b   : > { %641 = vmatmul.f32.gmra.mxu1 %v2690_v31 }
  0x8c   : > { %771 = vmatmul.f32.gmra.mxu3 %v296_v32  ;;  %v458_v32 = vld [vmem:[%s3510_s1 + $0x3d8] sm:$0xff] }
  0x8d   : > { %1120 = vmatpush.msra.mxu1 %v458_v32  ;;  %1251 = vmatpush.msra.mxu3 %v520_v46  ;;  %v2902_v46 = vld [vmem:[%s2237_s30 + $0x88] sm:$0xff] }
  0x8f   : > { %1121 = vmatpush.msra.mxu1 %v456_v47  ;;  %1252 = vmatpush.msra.mxu3 %v518_v5 }
  0x91   : > { %579 = vmatmul.f32.gmra.mxu0 %v2708_v38  ;;  %709 = vmatmul.f32.gmra.mxu2 %v301_v39  ;;  %v332_v39 = vld [vmem:[%s2237_s30 + $0x2e8] sm:$0xff] }
  0x92   : > { %1122 = vmatpush.msra.mxu1 %v454_v6  ;;  %1253 = vmatpush.msra.mxu3 %v516_v27  ;;  %v2946_v27 = vld [vmem:[%s2237_s30 + $0xe0] sm:$0xff] }
  0x93   : > { %644 = vmatmul.f32.gmra.mxu1 %v2712_v41 }
  0x94   : > { %774 = vmatmul.f32.gmra.mxu3 %v302_v43  ;;  %v488_v43 = vld [vmem:[%s3510_s1 + $0x4c8] sm:$0xff]  ;;  %1123 = vmatpush.msra.mxu1 %v452_v29 }
  0x95   : > { %1186 = vmatpush.msra.mxu2 %v488_v43 }
  0x99   : > { %582 = vmatmul.f32.gmra.mxu0 %v2730_v49  ;;  %712 = vmatmul.f32.gmra.mxu2 %v307_v51 }
  0x9b   : > { %647 = vmatmul.f32.gmra.mxu1 %v2734_v52 }
  0x9c   : > { %777 = vmatmul.f32.gmra.mxu3 %v308_v53  ;;  %v2848_v53 = vld [vmem:[%s2237_s30 + $0x20] sm:$0xff] }
  0xa1   : > { %585 = vmatmul.f32.gmra.mxu0 %v2752_v60  ;;  %715 = vmatmul.f32.gmra.mxu2 %v313_v61  ;;  %v486_v61 = vld [vmem:[%s3510_s1 + $0x4b8] sm:$0xff] }
  0xa2   : > { %1187 = vmatpush.msra.mxu2 %v486_v61  ;;  %v450_v61 = vld [vmem:[%s3510_s1 + $0x398] sm:$0xff] }
  0xa3   : > { %650 = vmatmul.f32.gmra.mxu1 %v2756_v63 }
  0xa4   : > { %780 = vmatmul.f32.gmra.mxu3 %v314_v0  ;;  %1124 = vmatpush.msra.mxu1 %v450_v61 }
  0xa9   : > { %588 = vmatmul.f32.gmra.mxu0 %v2774_v8  ;;  %718 = vmatmul.f32.gmra.mxu2 %v319_v9  ;;  %v2871_v9 = vld [vmem:[%s2237_s30 + $0x50] sm:$0xff] }
  0xab   : > { %653 = vmatmul.f32.gmra.mxu1 %v2778_v11 }
  0xac   : > { %783 = vmatmul.f32.gmra.mxu3 %v320_v13 }
  0xb1   : > { %591 = vmatmul.f32.gmra.mxu0 %v2796_v21  ;;  %721 = vmatmul.f32.gmra.mxu2 %v325_v23  ;;  %v484_v23 = vld [vmem:[%s3510_s1 + $0x4a8] sm:$0xff] }
  0xb2   : > { %1188 = vmatpush.msra.mxu2 %v484_v23  ;;  %v512_v23 = vld [vmem:[%s3510_s1 + $0x588] sm:$0xff] }
  0xb3   : > { %656 = vmatmul.f32.gmra.mxu1 %v2800_v24 }
  0xb4   : > { %786 = vmatmul.f32.gmra.mxu3 %v326_v25 }
  0xb9   : > { %594 = vmatmul.f32.gmra.mxu0 %v2818_v33  ;;  %724 = vmatmul.f32.gmra.mxu2 %v331_v35  ;;  %v2896_v35 = vld [vmem:[%s2237_s30 + $0x80] sm:$0xff] }
  0xbb   : > { %659 = vmatmul.f32.gmra.mxu1 %v2822_v36 }
  0xbc   : > { %789 = vmatmul.f32.gmra.mxu3 %v332_v39 }
  0xbe   : > { %v550_v51 = vpop.f32.mrf.mxu0 }
  0xbf   : > { %v551_v54 = vadd.f32 %v550_v51, %v2836_v44  ;;  %v482_v51 = vld [vmem:[%s3510_s1 + $0x498] sm:$0xff] }
  0xc0   : > { %v615_v55 = vpop.f32.mrf.mxu1  ;;  %1189 = vmatpush.msra.mxu2 %v482_v51  ;;  %v414_v51 = vld [vmem:[%s3510_s1 + $0x278] sm:$0xff] }
  0xc1   : > { %v616_v59 = vadd.f32 %v615_v55, %v551_v54  ;;  %809 = vmatmul.f32.vlgmr.msrb.gmra.mxu0 %v2848_v53  ;;  %939 = vmatmul.f32.vlgmr.msrb.gmra.mxu2 %v2434_v62  ;;  %v418_v55 = vld [vmem:[%s3510_s1 + $0x298] sm:$0xff] }
  0xc2   : > { %1059 = vmatpush.msra.mxu0 %v418_v55  ;;  %v446_v55 = vld [vmem:[%s3510_s1 + $0x378] sm:$0xff] }
  0xc3   : > { %874 = vmatmul.f32.vlgmr.msrb.gmra.mxu1 %v2852_v57 }
  0xc4   : > { %1004 = vmatmul.f32.vlgmr.msrb.gmra.mxu3 %v2447_v3  ;;  %v680_v0 = vpop.f32.mrf.mxu2 }
  0xc5   : > { %v681_v62 = vadd.f32 %v680_v0, %v616_v59  ;;  %v514_v59 = vld [vmem:[%s3510_s1 + $0x598] sm:$0xff] }
  0xc6   : > { %v553_v7 = vpop.f32.mrf.mxu0  ;;  %1254 = vmatpush.msra.mxu3 %v514_v59 }
  0xc7   : > { %v554_v3 = vadd.f32 %v553_v7, %v2836_v44  ;;  %v745_v13 = vpop.f32.mrf.mxu3  ;;  %v2927_v7 = vld [vmem:[%s2237_s30 + $0xb8] sm:$0xff] }
  0xc8   : > { %v2874_v15 = vadd.f32 %v745_v13, %v681_v62  ;;  %v618_v16 = vpop.f32.mrf.mxu1  ;;  %v480_v13 = vld [vmem:[%s3510_s1 + $0x488] sm:$0xff]  ;;  %1255 = vmatpush.msra.mxu3 %v512_v23 }
  0xc9   : > { %v619_v19 = vadd.f32 %v618_v16, %v554_v3  ;;  %812 = vmatmul.f32.gmra.mxu0 %v2871_v9  ;;  %942 = vmatmul.f32.gmra.mxu2 %v2480_v14  ;;  %v444_v23 = vld [vmem:[%s3510_s1 + $0x368] sm:$0xff] }
  0xca   : > { %1190 = vmatpush.msra.mxu2 %v480_v13 }
  0xcb   : > { %877 = vmatmul.f32.gmra.mxu1 %v2877_v17 }
  0xcc   : > { %1007 = vmatmul.f32.gmra.mxu3 %v2490_v18  ;;  %v683_v25 = vpop.f32.mrf.mxu2 }
  0xcd   : > { %v684_v14 = vadd.f32 %v683_v25, %v619_v19  ;;  %v416_v19 = vld [vmem:[%s3510_s1 + $0x288] sm:$0xff] }
  0xce   : > { %v556_v32 = vpop.f32.mrf.mxu0  ;;  %1060 = vmatpush.msra.mxu0 %v416_v19  ;;  %v448_v25 = vld [vmem:[%s3510_s1 + $0x388] sm:$0xff] }
  0xcf   : > { %v557_v18 = vadd.f32 %v556_v32, %v2836_v44  ;;  %v748_v39 = vpop.f32.mrf.mxu3  ;;  %1125 = vmatpush.msra.mxu1 %v448_v25  ;;  %v508_v19 = vld [vmem:[%s3510_s1 + $0x568] sm:$0xff]  ;;  %v2996_v25 = vld [vmem:[%s2237_s30 + $0x140] sm:$0xff] }
  0xd0   : > { %v2899_v43 = vadd.f32 %v748_v39, %v684_v14  ;;  %v621_v45 = vpop.f32.mrf.mxu1  ;;  %1061 = vmatpush.msra.mxu0 %v414_v51  ;;  %v410_v51 = vld [vmem:[%s3510_s1 + $0x258] sm:$0xff] }
  0xd1   : > { %v622_v47 = vadd.f32 %v621_v45, %v557_v18  ;;  %815 = vmatmul.f32.gmra.mxu0 %v2896_v35  ;;  %945 = vmatmul.f32.gmra.mxu2 %v2526_v30  ;;  %v2952_v18 = vld [vmem:[%s2237_s30 + $0xe8] sm:$0xff]  ;;  %v478_v45 = vld [vmem:[%s3510_s1 + $0x478] sm:$0xff] }
  0xd2   : > { %1191 = vmatpush.msra.mxu2 %v478_v45  ;;  %1126 = vmatpush.msra.mxu1 %v446_v55  ;;  %v474_v45 = vld [vmem:[%s3510_s1 + $0x458] sm:$0xff] }
  0xd3   : > { %880 = vmatmul.f32.gmra.mxu1 %v2902_v46 }
  0xd4   : > { %1010 = vmatmul.f32.gmra.mxu3 %v2536_v34  ;;  %v686_v54 = vpop.f32.mrf.mxu2  ;;  %1127 = vmatpush.msra.mxu1 %v444_v23  ;;  %v440_v23 = vld [vmem:[%s3510_s1 + $0x348] sm:$0xff] }
  0xd5   : > { %v687_v30 = vadd.f32 %v686_v54, %v622_v47  ;;  %v510_v54 = vld [vmem:[%s3510_s1 + $0x578] sm:$0xff] }
  0xd6   : > { %v559_v0 = vpop.f32.mrf.mxu0  ;;  %1256 = vmatpush.msra.mxu3 %v510_v54  ;;  %v506_v54 = vld [vmem:[%s3510_s1 + $0x558] sm:$0xff] }
  0xd7   : > { %v560_v34 = vadd.f32 %v559_v0, %v2836_v44  ;;  %v751_v5 = vpop.f32.mrf.mxu3 }
  0xd8   : > { %v2924_v62 = vadd.f32 %v751_v5, %v687_v30  ;;  %v624_v6 = vpop.f32.mrf.mxu1  ;;  %v2971_v30 = vld [vmem:[%s2237_s30 + $0x110] sm:$0xff]  ;;  %v2977_v5 = vld [vmem:[%s2237_s30 + $0x118] sm:$0xff]  ;;  %1257 = vmatpush.msra.mxu3 %v508_v19  ;;  %v408_v19 = vld [vmem:[%s3510_s1 + $0x248] sm:$0xff] }
  0xd9   : > { %v625_v3 = vadd.f32 %v624_v6, %v560_v34  ;;  %818 = vmatmul.f32.gmra.mxu0 %v2921_v2  ;;  %948 = vmatmul.f32.gmra.mxu2 %v2554_v40 }
  0xda   : > { %1258 = vmatpush.msra.mxu3 %v506_v54 }
  0xdb   : > { %883 = vmatmul.f32.gmra.mxu1 %v2927_v7 }
  0xdc   : > { %1013 = vmatmul.f32.gmra.mxu3 %v2558_v42  ;;  %v689_v16 = vpop.f32.mrf.mxu2 }
  0xdd   : > { %v690_v40 = vadd.f32 %v689_v16, %v625_v3  ;;  %v476_v3 = vld [vmem:[%s3510_s1 + $0x468] sm:$0xff] }
  0xde   : > { %v562_v26 = vpop.f32.mrf.mxu0  ;;  %1192 = vmatpush.msra.mxu2 %v476_v3  ;;  %v412_v16 = vld [vmem:[%s3510_s1 + $0x268] sm:$0xff] }
  0xdf   : > { %v563_v42 = vadd.f32 %v562_v26, %v2836_v44  ;;  %v754_v14 = vpop.f32.mrf.mxu3  ;;  %1062 = vmatpush.msra.mxu0 %v412_v16 }
  0xe0   : > { %v2949_v29 = vadd.f32 %v754_v14, %v690_v40  ;;  %v627_v32 = vpop.f32.mrf.mxu1  ;;  %1193 = vmatpush.msra.mxu2 %v474_v45  ;;  %v3052_v45 = vld [vmem:[%s2237_s30 + $0x1a8] sm:$0xff] }
  0xe1   : > { %v628_v39 = vadd.f32 %v627_v32, %v563_v42  ;;  %821 = vmatmul.f32.gmra.mxu0 %v2946_v27  ;;  %951 = vmatmul.f32.gmra.mxu2 %v2576_v48  ;;  %v3002_v32 = vld [vmem:[%s2237_s30 + $0x148] sm:$0xff] }
  0xe2   : > { %1063 = vmatpush.msra.mxu0 %v410_v51  ;;  %v470_v51 = vld [vmem:[%s3510_s1 + $0x438] sm:$0xff] }
  0xe3   : > { %886 = vmatmul.f32.gmra.mxu1 %v2952_v18 }
  0xe4   : > { %1016 = vmatmul.f32.gmra.mxu3 %v2580_v50  ;;  %v692_v47 = vpop.f32.mrf.mxu2  ;;  %1064 = vmatpush.msra.mxu0 %v408_v19 }
  0xe5   : > { %v693_v48 = vadd.f32 %v692_v47, %v628_v39 }
  0xe6   : > { %v565_v59 = vpop.f32.mrf.mxu0 }
  0xe7   : > { %v566_v50 = vadd.f32 %v565_v59, %v2836_v44  ;;  %v757_v61 = vpop.f32.mrf.mxu3  ;;  %v3021_v59 = vld [vmem:[%s2237_s30 + $0x170] sm:$0xff] }
  0xe8   : > { %v2974_v0 = vadd.f32 %v757_v61, %v693_v48  ;;  %v630_v34 = vpop.f32.mrf.mxu1  ;;  %v442_v48 = vld [vmem:[%s3510_s1 + $0x358] sm:$0xff] }
  0xe9   : > { %v631_v6 = vadd.f32 %v630_v34, %v566_v50  ;;  %824 = vmatmul.f32.gmra.mxu0 %v2971_v30  ;;  %954 = vmatmul.f32.gmra.mxu2 %v2598_v56 }
  0xea   : > { %1128 = vmatpush.msra.mxu1 %v442_v48  ;;  %v502_v48 = vld [vmem:[%s3510_s1 + $0x538] sm:$0xff] }
  0xeb   : > { %889 = vmatmul.f32.gmra.mxu1 %v2977_v5 }
  0xec   : > { %1019 = vmatmul.f32.gmra.mxu3 %v2602_v58  ;;  %v695_v13 = vpop.f32.mrf.mxu2  ;;  %1129 = vmatpush.msra.mxu1 %v440_v23  ;;  %v404_v23 = vld [vmem:[%s3510_s1 + $0x228] sm:$0xff] }
  0xed   : > { %v696_v56 = vadd.f32 %v695_v13, %v631_v6  ;;  %v3027_v6 = vld [vmem:[%s2237_s30 + $0x178] sm:$0xff]  ;;  %v472_v13 = vld [vmem:[%s3510_s1 + $0x448] sm:$0xff] }
  0xee   : > { %v568_v40 = vpop.f32.mrf.mxu0  ;;  %1194 = vmatpush.msra.mxu2 %v472_v13 }
  0xef   : > { %v569_v58 = vadd.f32 %v568_v40, %v2836_v44  ;;  %v760_v26 = vpop.f32.mrf.mxu3 }
  0xf0   : > { %v2999_v42 = vadd.f32 %v760_v26, %v696_v56  ;;  %v633_v14 = vpop.f32.mrf.mxu1  ;;  %v504_v56 = vld [vmem:[%s3510_s1 + $0x548] sm:$0xff]  ;;  %1195 = vmatpush.msra.mxu2 %v470_v51 }
  0xf1   : > { %v634_v39 = vadd.f32 %v633_v14, %v569_v58  ;;  %827 = vmatmul.f32.gmra.mxu0 %v2996_v25  ;;  %957 = vmatmul.f32.gmra.mxu2 %v2620_v1  ;;  %v3046_v58 = vld [vmem:[%s2237_s30 + $0x1a0] sm:$0xff] }
  0xf2   : > { %1259 = vmatpush.msra.mxu3 %v504_v56  ;;  %v468_v56 = vld [vmem:[%s3510_s1 + $0x428] sm:$0xff] }
  0xf3   : > { %892 = vmatmul.f32.gmra.mxu1 %v3002_v32  ;;  %1196 = vmatpush.msra.mxu2 %v468_v56 }
  0xf4   : > { %1022 = vmatmul.f32.gmra.mxu3 %v2624_v4  ;;  %v698_v47 = vpop.f32.mrf.mxu2 }
  0xf5   : > { %v699_v1 = vadd.f32 %v698_v47, %v634_v39  ;;  %1260 = vmatpush.msra.mxu3 %v502_v48 }
  0xf6   : > { %v571_v55 = vpop.f32.mrf.mxu0 }
  0xf7   : > { %v572_v4 = vadd.f32 %v571_v55, %v2836_v44  ;;  %v763_v50 = vpop.f32.mrf.mxu3  ;;  %v438_v55 = vld [vmem:[%s3510_s1 + $0x338] sm:$0xff] }
  0xf8   : > { %v3024_v61 = vadd.f32 %v763_v50, %v699_v1  ;;  %v636_v34 = vpop.f32.mrf.mxu1  ;;  %v406_v1 = vld [vmem:[%s3510_s1 + $0x238] sm:$0xff]  ;;  %v3071_v50 = vld [vmem:[%s2237_s30 + $0x1d0] sm:$0xff]  ;;  %1130 = vmatpush.msra.mxu1 %v438_v55 }
  0xf9   : > { %v637_v3 = vadd.f32 %v636_v34, %v572_v4  ;;  %830 = vmatmul.f32.gmra.mxu0 %v3021_v59  ;;  %960 = vmatmul.f32.gmra.mxu2 %v2642_v10 }
  0xfa   : > { %1065 = vmatpush.msra.mxu0 %v406_v1  ;;  %v3102_v1 = vld [vmem:[%s2237_s30 + $0x208] sm:$0xff] }
  0xfb   : > { %895 = vmatmul.f32.gmra.mxu1 %v3027_v6 }
  0xfc   : > { %1025 = vmatmul.f32.gmra.mxu3 %v2646_v12  ;;  %v701_v16 = vpop.f32.mrf.mxu2  ;;  %1066 = vmatpush.msra.mxu0 %v404_v23 }
  0xfd   : > { %v702_v10 = vadd.f32 %v701_v16, %v637_v3  ;;  %v3077_v16 = vld [vmem:[%s2237_s30 + $0x1d8] sm:$0xff] }
  0xfe   : > { %v574_v40 = vpop.f32.mrf.mxu0 }
  0xff   : > { %v575_v12 = vadd.f32 %v574_v40, %v2836_v44  ;;  %v766_v26 = vpop.f32.mrf.mxu3  ;;  %v500_v40 = vld [vmem:[%s3510_s1 + $0x528] sm:$0xff] }
 0x100   : > { %v3049_v14 = vadd.f32 %v766_v26, %v702_v10  ;;  %v639_v39 = vpop.f32.mrf.mxu1  ;;  %1261 = vmatpush.msra.mxu3 %v500_v40  ;;  %v3127_v40 = vld [vmem:[%s2237_s30 + $0x238] sm:$0xff] }
 0x101   : > { %v640_v47 = vadd.f32 %v639_v39, %v575_v12  ;;  %833 = vmatmul.f32.gmra.mxu0 %v3046_v58  ;;  %963 = vmatmul.f32.gmra.mxu2 %v2664_v20  ;;  %v436_v12 = vld [vmem:[%s3510_s1 + $0x328] sm:$0xff]  ;;  %v3096_v39 = vld [vmem:[%s2237_s30 + $0x200] sm:$0xff] }
 0x102   : > { %1131 = vmatpush.msra.mxu1 %v436_v12  ;;  %v464_v12 = vld [vmem:[%s3510_s1 + $0x408] sm:$0xff] }
 0x103   : > { %898 = vmatmul.f32.gmra.mxu1 %v3052_v45 }
 0x104   : > { %1028 = vmatmul.f32.gmra.mxu3 %v2668_v22  ;;  %v704_v54 = vpop.f32.mrf.mxu2 }
 0x105   : > { %v705_v20 = vadd.f32 %v704_v54, %v640_v47 }
 0x106   : > { %v577_v4 = vpop.f32.mrf.mxu0 }
 0x107   : > { %v578_v22 = vadd.f32 %v577_v4, %v2836_v44  ;;  %v769_v34 = vpop.f32.mrf.mxu3  ;;  %v402_v4 = vld [vmem:[%s3510_s1 + $0x218] sm:$0xff] }
 0x108   : > { %v3074_v3 = vadd.f32 %v769_v34, %v705_v20  ;;  %v642_v13 = vpop.f32.mrf.mxu1  ;;  %v466_v20 = vld [vmem:[%s3510_s1 + $0x418] sm:$0xff]  ;;  %1067 = vmatpush.msra.mxu0 %v402_v4 }
 0x109   : > { %v643_v19 = vadd.f32 %v642_v13, %v578_v22  ;;  %836 = vmatmul.f32.gmra.mxu0 %v3071_v50  ;;  %966 = vmatmul.f32.gmra.mxu2 %v2686_v28  ;;  %v498_v22 = vld [vmem:[%s3510_s1 + $0x518] sm:$0xff] }
 0x10a   : > { %1197 = vmatpush.msra.mxu2 %v466_v20  ;;  %1262 = vmatpush.msra.mxu3 %v498_v22  ;;  %v434_v34 = vld [vmem:[%s3510_s1 + $0x318] sm:$0xff]  ;;  %v3146_v20 = vld [vmem:[%s2237_s30 + $0x260] sm:$0xff] }
 0x10b   : > { %901 = vmatmul.f32.gmra.mxu1 %v3077_v16 }
 0x10c   : > { %1031 = vmatmul.f32.gmra.mxu3 %v2690_v31  ;;  %v707_v10 = vpop.f32.mrf.mxu2  ;;  %1132 = vmatpush.msra.mxu1 %v434_v34 }
 0x10d   : > { %v708_v28 = vadd.f32 %v707_v10, %v643_v19  ;;  %v3121_v19 = vld [vmem:[%s2237_s30 + $0x230] sm:$0xff]  ;;  %1198 = vmatpush.msra.mxu2 %v464_v12 }
 0x10e   : > { %v580_v26 = vpop.f32.mrf.mxu0 }
 0x10f   : > { %v581_v31 = vadd.f32 %v580_v26, %v2836_v44  ;;  %v772_v47 = vpop.f32.mrf.mxu3 }
 0x110   : > { %v3099_v51 = vadd.f32 %v772_v47, %v708_v28  ;;  %v645_v54 = vpop.f32.mrf.mxu1  ;;  %v496_v47 = vld [vmem:[%s3510_s1 + $0x508] sm:$0xff] }
 0x111   : > { %v646_v48 = vadd.f32 %v645_v54, %v581_v31  ;;  %839 = vmatmul.f32.gmra.mxu0 %v3096_v39  ;;  %969 = vmatmul.f32.gmra.mxu2 %v2708_v38  ;;  %v400_v31 = vld [vmem:[%s3510_s1 + $0x208] sm:$0xff] }
 0x112   : > { %1068 = vmatpush.msra.mxu0 %v400_v31  ;;  %1263 = vmatpush.msra.mxu3 %v496_v47  ;;  %v432_v54 = vld [vmem:[%s3510_s1 + $0x308] sm:$0xff]  ;;  %v3165_v47 = vld [vmem:[%s2237_s30 + $0x298] sm:$0xff] }
 0x113   : > { %904 = vmatmul.f32.gmra.mxu1 %v3102_v1 }
 0x114   : > { %1034 = vmatmul.f32.gmra.mxu3 %v2712_v41  ;;  %v710_v55 = vpop.f32.mrf.mxu2  ;;  %1133 = vmatpush.msra.mxu1 %v432_v54 }
 0x115   : > { %v711_v38 = vadd.f32 %v710_v55, %v646_v48 }
 0x116   : > { %v583_v13 = vpop.f32.mrf.mxu0 }
 0x117   : > { %v584_v41 = vadd.f32 %v583_v13, %v2836_v44  ;;  %v775_v56 = vpop.f32.mrf.mxu3 }
 0x118   : > { %v3124_v10 = vadd.f32 %v775_v56, %v711_v38  ;;  %v648_v23 = vpop.f32.mrf.mxu1  ;;  %v3152_v38 = vld [vmem:[%s2237_s30 + $0x268] sm:$0xff] }
 0x119   : > { %v649_v28 = vadd.f32 %v648_v23, %v584_v41  ;;  %842 = vmatmul.f32.gmra.mxu0 %v3121_v19  ;;  %972 = vmatmul.f32.gmra.mxu2 %v2730_v49  ;;  %v3159_v23 = vld [vmem:[%s2237_s30 + $0x290] sm:$0xff] }
 0x11b   : > { %907 = vmatmul.f32.gmra.mxu1 %v3127_v40 }
 0x11c   : > { %1037 = vmatmul.f32.gmra.mxu3 %v2734_v52  ;;  %v713_v26 = vpop.f32.mrf.mxu2 }
 0x11d   : > { %v714_v49 = vadd.f32 %v713_v26, %v649_v28 }
 0x11e   : > { %v586_v48 = vpop.f32.mrf.mxu0 }
 0x11f   : > { %v587_v52 = vadd.f32 %v586_v48, %v2836_v44  ;;  %v778_v55 = vpop.f32.mrf.mxu3  ;;  %v3172_v48 = vld [vmem:[%s2237_s30 + $0x2c0] sm:$0xff] }
 0x120   : > { %v3149_v4 = vadd.f32 %v778_v55, %v714_v49  ;;  %v651_v22 = vpop.f32.mrf.mxu1 }
 0x121   : > { %v652_v34 = vadd.f32 %v651_v22, %v587_v52  ;;  %845 = vmatmul.f32.gmra.mxu0 %v3146_v20  ;;  %975 = vmatmul.f32.gmra.mxu2 %v2752_v60 }
 0x123   : > { %910 = vmatmul.f32.gmra.mxu1 %v3152_v38 }
 0x124   : > { %1040 = vmatmul.f32.gmra.mxu3 %v2756_v63  ;;  %v716_v13 = vpop.f32.mrf.mxu2 }
 0x125   : > { %v717_v41 = vadd.f32 %v716_v13, %v652_v34  ;;  %v3178_v13 = vld [vmem:[%s2237_s30 + $0x2c8] sm:$0xff] }
 0x126   : > { %v589_v56 = vpop.f32.mrf.mxu0 }
 0x127   : > { %v590_v28 = vadd.f32 %v589_v56, %v2836_v44  ;;  %v781_v12 = vpop.f32.mrf.mxu3 }
 0x128   : > { %v3162_v26 = vadd.f32 %v781_v12, %v717_v41  ;;  %v654_v31 = vpop.f32.mrf.mxu1 }
 0x129   : > { %v655_v60 = vadd.f32 %v654_v31, %v590_v28  ;;  %848 = vmatmul.f32.gmra.mxu0 %v3159_v23  ;;  %978 = vmatmul.f32.gmra.mxu2 %v2774_v8  ;;  %v3185_v28 = vld [vmem:[%s2237_s30 + $0x2f0] sm:$0xff] }
 0x12b   : > { %913 = vmatmul.f32.gmra.mxu1 %v3165_v47 }
 0x12c   : > { %1043 = vmatmul.f32.gmra.mxu3 %v2778_v11  ;;  %v719_v63 = vpop.f32.mrf.mxu2 }
 0x12d   : > { %v720_v49 = vadd.f32 %v719_v63, %v655_v60 }
 0x12e   : > { %v592_v54 = vpop.f32.mrf.mxu0 }
 0x12f   : > { %v593_v52 = vadd.f32 %v592_v54, %v2836_v44  ;;  %v784_v55 = vpop.f32.mrf.mxu3 }
 0x130   : > { %v3175_v22 = vadd.f32 %v784_v55, %v720_v49  ;;  %v657_v34 = vpop.f32.mrf.mxu1  ;;  %v3191_v49 = vld [vmem:[%s2237_s30 + $0x2f8] sm:$0xff] }
 0x131   : > { %v658_v8 = vadd.f32 %v657_v34, %v593_v52  ;;  %851 = vmatmul.f32.gmra.mxu0 %v3172_v48  ;;  %981 = vmatmul.f32.gmra.mxu2 %v2796_v21 }
 0x133   : > { %916 = vmatmul.f32.gmra.mxu1 %v3178_v13 }
 0x134   : > { %1046 = vmatmul.f32.gmra.mxu3 %v2800_v24  ;;  %v722_v11 = vpop.f32.mrf.mxu2 }
 0x135   : > { %v723_v41 = vadd.f32 %v722_v11, %v658_v8 }
 0x136   : > { %v595_v56 = vpop.f32.mrf.mxu0 }
 0x137   : > { %v596_v12 = vadd.f32 %v595_v56, %v2836_v44  ;;  %v787_v31 = vpop.f32.mrf.mxu3 }
 0x138   : > { %v3188_v60 = vadd.f32 %v787_v31, %v723_v41  ;;  %v660_v63 = vpop.f32.mrf.mxu1  ;;  %v1965_v41 = vld [vmem:[%s2237_s30 + $0x10] sm:$0xff] }
 0x139   : > { %v661_v54 = vadd.f32 %v660_v63, %v596_v12  ;;  %854 = vmatmul.f32.gmra.mxu0 %v3185_v28  ;;  %984 = vmatmul.f32.gmra.mxu2 %v2818_v33  ;;  %v3203_v33 = vperm.slane %v2827_v37, 1  ;;  %v1967_v37 = vld [vmem:[%s2237_s30 + $0x40] sm:$0xff] }
 0x13b   : > { %919 = vmatmul.f32.gmra.mxu1 %v3191_v49 }
 0x13c   : > { %1049 = vmatmul.f32.gmra.mxu3 %v2822_v36  ;;  %v725_v21 = vpop.f32.mrf.mxu2  ;;  %v1966_v36 = vld [vmem:[%s2237_s30 + $0x18] sm:$0xff] }
 0x13d   : > { %v726_v24 = vadd.f32 %v725_v21, %v661_v54 }
 0x13e   : > { %v810_v44 = vpop.f32.mrf.mxu0 }
 0x13f   : > { %v790_v52 = vpop.f32.mrf.mxu3  ;;  %v811_v55 = vadd.f32 %v810_v44, %v2874_v15 }
 0x140   : > { %v3198_v34 = vadd.f32 %v790_v52, %v726_v24  ;;  %v875_v8 = vpop.f32.mrf.mxu1  ;;  %v1968_v24 = vld [vmem:[%s2237_s30 + $0x48] sm:$0xff] }
 0x141   : > { %v876_v11 = vadd.f32 %v875_v8, %v811_v55  ;;  %1069 = vmatmul.f32.vlgmr.msra.gmra.mxu0 %v1965_v41  ;;  %1199 = vmatmul.f32.vlgmr.msra.gmra.mxu2 %v2848_v53 }
 0x143   : > { %1313 = vst [vmem:[#allocation2] sm:$0xff] %v876_v11  ;;  %1134 = vmatmul.f32.vlgmr.msra.gmra.mxu1 %v1966_v36  ;;  %v1969_v36 = vld [vmem:[%s2237_s30 + $0x70] sm:$0xff] }
 0x144   : > { %1264 = vmatmul.f32.vlgmr.msra.gmra.mxu3 %v2852_v57  ;;  %v940_v56 = vpop.f32.mrf.mxu2 }
 0x145   : > { %v941_v15 = vadd.f32 %v940_v56, %v3203_v33 }
 0x146   : > { %v813_v12 = vpop.f32.mrf.mxu0 }
 0x147   : > { %v814_v31 = vadd.f32 %v813_v12, %v2899_v43  ;;  %v1005_v63 = vpop.f32.mrf.mxu3 }
 0x148   : > { %v3209_v54 = vadd.f32 %v1005_v63, %v941_v15  ;;  %v878_v21 = vpop.f32.mrf.mxu1 }
 0x149   : > { %v879_v53 = vadd.f32 %v878_v21, %v814_v31  ;;  %1072 = vmatmul.f32.gmra.mxu0 %v1967_v37  ;;  %1202 = vmatmul.f32.gmra.mxu2 %v2871_v9  ;;  %v1970_v9 = vld [vmem:[%s2237_s30 + $0x78] sm:$0xff] }
 0x14b   : > { %1316 = vst [vmem:[#allocation2 + $0x10] sm:$0xff] %v879_v53  ;;  %1137 = vmatmul.f32.gmra.mxu1 %v1968_v24  ;;  %v1971_v53 = vld [vmem:[%s2237_s30 + $0xa0] sm:$0xff] }
 0x14c   : > { %1267 = vmatmul.f32.gmra.mxu3 %v2877_v17  ;;  %v943_v57 = vpop.f32.mrf.mxu2 }
 0x14d   : > { %v944_v44 = vadd.f32 %v943_v57, %v3203_v33 }
 0x14e   : > { %v816_v43 = vpop.f32.mrf.mxu0 }
 0x14f   : > { %v817_v52 = vadd.f32 %v816_v43, %v2924_v62  ;;  %v1008_v55 = vpop.f32.mrf.mxu3 }
 0x150   : > { %v3217_v8 = vadd.f32 %v1008_v55, %v944_v44  ;;  %v881_v11 = vpop.f32.mrf.mxu1  ;;  %v1973_v55 = vld [vmem:[%s2237_s30 + $0xd0] sm:$0xff] }
 0x151   : > { %v882_v41 = vadd.f32 %v881_v11, %v817_v52  ;;  %1075 = vmatmul.f32.gmra.mxu0 %v1969_v36  ;;  %1205 = vmatmul.f32.gmra.mxu2 %v2896_v35  ;;  %v1972_v35 = vld [vmem:[%s2237_s30 + $0xa8] sm:$0xff] }
 0x153   : > { %1318 = vst [vmem:[#allocation2 + $0x20] sm:$0xff] %v882_v41  ;;  %1140 = vmatmul.f32.gmra.mxu1 %v1970_v9 }
 0x154   : > { %1270 = vmatmul.f32.gmra.mxu3 %v2902_v46  ;;  %v946_v17 = vpop.f32.mrf.mxu2 }
 0x155   : > { %v947_v56 = vadd.f32 %v946_v17, %v3203_v33 }
 0x156   : > { %v819_v62 = vpop.f32.mrf.mxu0 }
 0x157   : > { %v820_v15 = vadd.f32 %v819_v62, %v2949_v29  ;;  %v1011_v12 = vpop.f32.mrf.mxu3  ;;  %v1975_v62 = vld [vmem:[%s2237_s30 + $0x100] sm:$0xff] }
 0x158   : > { %v3225_v31 = vadd.f32 %v1011_v12, %v947_v56  ;;  %v884_v63 = vpop.f32.mrf.mxu1 }
 0x159   : > { %v885_v21 = vadd.f32 %v884_v63, %v820_v15  ;;  %1078 = vmatmul.f32.gmra.mxu0 %v1971_v53  ;;  %1208 = vmatmul.f32.gmra.mxu2 %v2921_v2  ;;  %v1974_v2 = vld [vmem:[%s2237_s30 + $0xd8] sm:$0xff] }
 0x15b   : > { %1320 = vst [vmem:[#allocation2 + $0x30] sm:$0xff] %v885_v21  ;;  %1143 = vmatmul.f32.gmra.mxu1 %v1972_v35 }
 0x15c   : > { %1273 = vmatmul.f32.gmra.mxu3 %v2927_v7  ;;  %v949_v46 = vpop.f32.mrf.mxu2 }
 0x15d   : > { %v950_v37 = vadd.f32 %v949_v46, %v3203_v33  ;;  %v1977_v46 = vld [vmem:[%s2237_s30 + $0x130] sm:$0xff] }
 0x15e   : > { %v822_v29 = vpop.f32.mrf.mxu0 }
 0x15f   : > { %v823_v24 = vadd.f32 %v822_v29, %v2974_v0  ;;  %v1014_v57 = vpop.f32.mrf.mxu3 }
 0x160   : > { %v3233_v44 = vadd.f32 %v1014_v57, %v950_v37  ;;  %v887_v43 = vpop.f32.mrf.mxu1 }
 0x161   : > { %v888_v52 = vadd.f32 %v887_v43, %v823_v24  ;;  %1081 = vmatmul.f32.gmra.mxu0 %v1973_v55  ;;  %1211 = vmatmul.f32.gmra.mxu2 %v2946_v27  ;;  %v1976_v27 = vld [vmem:[%s2237_s30 + $0x108] sm:$0xff]  ;;  %v1979_v55 = vld [vmem:[%s2237_s30 + $0x160] sm:$0xff] }
 0x163   : > { %1322 = vst [vmem:[#allocation2 + $0x40] sm:$0xff] %v888_v52  ;;  %1146 = vmatmul.f32.gmra.mxu1 %v1974_v2 }
 0x164   : > { %1276 = vmatmul.f32.gmra.mxu3 %v2952_v18  ;;  %v952_v7 = vpop.f32.mrf.mxu2 }
 0x165   : > { %v953_v11 = vadd.f32 %v952_v7, %v3203_v33 }
 0x166   : > { %v825_v0 = vpop.f32.mrf.mxu0 }
 0x167   : > { %v826_v41 = vadd.f32 %v825_v0, %v2999_v42  ;;  %v1017_v36 = vpop.f32.mrf.mxu3 }
 0x168   : > { %v3241_v9 = vadd.f32 %v1017_v36, %v953_v11  ;;  %v890_v17 = vpop.f32.mrf.mxu1 }
 0x169   : > { %v891_v56 = vadd.f32 %v890_v17, %v826_v41  ;;  %1084 = vmatmul.f32.gmra.mxu0 %v1975_v62  ;;  %1214 = vmatmul.f32.gmra.mxu2 %v2971_v30  ;;  %v1978_v30 = vld [vmem:[%s2237_s30 + $0x138] sm:$0xff]  ;;  %v1981_v17 = vld [vmem:[%s2237_s30 + $0x190] sm:$0xff] }
 0x16b   : > { %1324 = vst [vmem:[#allocation2 + $0x50] sm:$0xff] %v891_v56  ;;  %1149 = vmatmul.f32.gmra.mxu1 %v1976_v27 }
 0x16c   : > { %1279 = vmatmul.f32.gmra.mxu3 %v2977_v5  ;;  %v955_v18 = vpop.f32.mrf.mxu2 }
 0x16d   : > { %v956_v15 = vadd.f32 %v955_v18, %v3203_v33 }
 0x16e   : > { %v828_v42 = vpop.f32.mrf.mxu0 }
 0x16f   : > { %v829_v12 = vadd.f32 %v828_v42, %v3024_v61  ;;  %v1020_v63 = vpop.f32.mrf.mxu3 }
 0x170   : > { %v3249_v21 = vadd.f32 %v1020_v63, %v956_v15  ;;  %v893_v53 = vpop.f32.mrf.mxu1 }
 0x171   : > { %v894_v35 = vadd.f32 %v893_v53, %v829_v12  ;;  %1087 = vmatmul.f32.gmra.mxu0 %v1977_v46  ;;  %1217 = vmatmul.f32.gmra.mxu2 %v2996_v25  ;;  %v1980_v25 = vld [vmem:[%s2237_s30 + $0x168] sm:$0xff]  ;;  %v1983_v12 = vld [vmem:[%s2237_s30 + $0x1c0] sm:$0xff] }
 0x173   : > { %1326 = vst [vmem:[#allocation2 + $0x60] sm:$0xff] %v894_v35  ;;  %1152 = vmatmul.f32.gmra.mxu1 %v1978_v30 }
 0x174   : > { %1282 = vmatmul.f32.gmra.mxu3 %v3002_v32  ;;  %v958_v5 = vpop.f32.mrf.mxu2 }
 0x175   : > { %v959_v37 = vadd.f32 %v958_v5, %v3203_v33 }
 0x176   : > { %v831_v61 = vpop.f32.mrf.mxu0 }
 0x177   : > { %v832_v29 = vadd.f32 %v831_v61, %v3049_v14  ;;  %v1023_v24 = vpop.f32.mrf.mxu3 }
 0x178   : > { %v3257_v57 = vadd.f32 %v1023_v24, %v959_v37  ;;  %v896_v43 = vpop.f32.mrf.mxu1  ;;  %v1985_v37 = vld [vmem:[%s2237_s30 + $0x1f0] sm:$0xff] }
 0x179   : > { %v897_v52 = vadd.f32 %v896_v43, %v832_v29  ;;  %1090 = vmatmul.f32.gmra.mxu0 %v1979_v55  ;;  %1220 = vmatmul.f32.gmra.mxu2 %v3021_v59  ;;  %v1982_v59 = vld [vmem:[%s2237_s30 + $0x198] sm:$0xff] }
 0x17b   : > { %1328 = vst [vmem:[#allocation2 + $0x70] sm:$0xff] %v897_v52  ;;  %1155 = vmatmul.f32.gmra.mxu1 %v1980_v25  ;;  %v1987_v25 = vld [vmem:[%s2237_s30 + $0x220] sm:$0xff] }
 0x17c   : > { %1285 = vmatmul.f32.gmra.mxu3 %v3027_v6  ;;  %v961_v32 = vpop.f32.mrf.mxu2 }
 0x17d   : > { %v962_v2 = vadd.f32 %v961_v32, %v3203_v33 }
 0x17e   : > { %v834_v14 = vpop.f32.mrf.mxu0 }
 0x17f   : > { %v835_v7 = vadd.f32 %v834_v14, %v3074_v3  ;;  %v1026_v11 = vpop.f32.mrf.mxu3 }
 0x180   : > { %v3265_v0 = vadd.f32 %v1026_v11, %v962_v2  ;;  %v899_v41 = vpop.f32.mrf.mxu1 }
 0x181   : > { %v900_v36 = vadd.f32 %v899_v41, %v835_v7  ;;  %1093 = vmatmul.f32.gmra.mxu0 %v1981_v17  ;;  %1223 = vmatmul.f32.gmra.mxu2 %v3046_v58  ;;  %v1984_v58 = vld [vmem:[%s2237_s30 + $0x1c8] sm:$0xff] }
 0x183   : > { %1330 = vst [vmem:[#allocation2 + $0x80] sm:$0xff] %v900_v36  ;;  %1158 = vmatmul.f32.gmra.mxu1 %v1982_v59  ;;  %v1989_v36 = vld [vmem:[%s2237_s30 + $0x250] sm:$0xff] }
 0x184   : > { %1288 = vmatmul.f32.gmra.mxu3 %v3052_v45  ;;  %v964_v6 = vpop.f32.mrf.mxu2 }
 0x185   : > { %v965_v56 = vadd.f32 %v964_v6, %v3203_v33 }
 0x186   : > { %v837_v3 = vpop.f32.mrf.mxu0 }
 0x187   : > { %v838_v62 = vadd.f32 %v837_v3, %v3099_v51  ;;  %v1029_v27 = vpop.f32.mrf.mxu3 }
 0x188   : > { %v3273_v18 = vadd.f32 %v1029_v27, %v965_v56  ;;  %v902_v15 = vpop.f32.mrf.mxu1  ;;  %v1991_v27 = vld [vmem:[%s2237_s30 + $0x280] sm:$0xff] }
 0x189   : > { %v903_v42 = vadd.f32 %v902_v15, %v838_v62  ;;  %1096 = vmatmul.f32.gmra.mxu0 %v1983_v12  ;;  %1226 = vmatmul.f32.gmra.mxu2 %v3071_v50  ;;  %v1986_v50 = vld [vmem:[%s2237_s30 + $0x1f8] sm:$0xff] }
 0x18b   : > { %1332 = vst [vmem:[#allocation2 + $0x90] sm:$0xff] %v903_v42  ;;  %1161 = vmatmul.f32.gmra.mxu1 %v1984_v58 }
 0x18c   : > { %1291 = vmatmul.f32.gmra.mxu3 %v3077_v16  ;;  %v967_v45 = vpop.f32.mrf.mxu2 }
 0x18d   : > { %v968_v63 = vadd.f32 %v967_v45, %v3203_v33 }
 0x18e   : > { %v840_v51 = vpop.f32.mrf.mxu0 }
 0x18f   : > { %v841_v53 = vadd.f32 %v840_v51, %v3124_v10  ;;  %v1032_v35 = vpop.f32.mrf.mxu3  ;;  %v1993_v51 = vld [vmem:[%s2237_s30 + $0x2b0] sm:$0xff] }
 0x190   : > { %v3281_v46 = vadd.f32 %v1032_v35, %v968_v63  ;;  %v905_v30 = vpop.f32.mrf.mxu1 }
 0x191   : > { %v906_v5 = vadd.f32 %v905_v30, %v841_v53  ;;  %1099 = vmatmul.f32.gmra.mxu0 %v1985_v37  ;;  %1229 = vmatmul.f32.gmra.mxu2 %v3096_v39  ;;  %v1988_v39 = vld [vmem:[%s2237_s30 + $0x228] sm:$0xff] }
 0x193   : > { %1334 = vst [vmem:[#allocation2 + $0xa0] sm:$0xff] %v906_v5  ;;  %1164 = vmatmul.f32.gmra.mxu1 %v1986_v50 }
 0x194   : > { %1294 = vmatmul.f32.gmra.mxu3 %v3102_v1  ;;  %v970_v16 = vpop.f32.mrf.mxu2 }
 0x195   : > { %v971_v61 = vadd.f32 %v970_v16, %v3203_v33  ;;  %v1995_v16 = vld [vmem:[%s2237_s30 + $0x2e0] sm:$0xff] }
 0x196   : > { %v843_v10 = vpop.f32.mrf.mxu0 }
 0x197   : > { %v844_v29 = vadd.f32 %v843_v10, %v3149_v4  ;;  %v1035_v24 = vpop.f32.mrf.mxu3 }
 0x198   : > { %v3289_v43 = vadd.f32 %v1035_v24, %v971_v61  ;;  %v908_v52 = vpop.f32.mrf.mxu1 }
 0x199   : > { %v909_v55 = vadd.f32 %v908_v52, %v844_v29  ;;  %1102 = vmatmul.f32.gmra.mxu0 %v1987_v25  ;;  %1232 = vmatmul.f32.gmra.mxu2 %v3121_v19  ;;  %v1990_v19 = vld [vmem:[%s2237_s30 + $0x258] sm:$0xff] }
 0x19b   : > { %1336 = vst [vmem:[#allocation2 + $0xb0] sm:$0xff] %v909_v55  ;;  %1167 = vmatmul.f32.gmra.mxu1 %v1988_v39 }
 0x19c   : > { %1297 = vmatmul.f32.gmra.mxu3 %v3127_v40  ;;  %v973_v1 = vpop.f32.mrf.mxu2 }
 0x19d   : > { %v974_v32 = vadd.f32 %v973_v1, %v3203_v33 }
 0x19e   : > { %v846_v4 = vpop.f32.mrf.mxu0 }
 0x19f   : > { %v847_v2 = vadd.f32 %v846_v4, %v3162_v26  ;;  %v1038_v14 = vpop.f32.mrf.mxu3 }
 0x1a0   : > { %v3297_v7 = vadd.f32 %v1038_v14, %v974_v32  ;;  %v911_v11 = vpop.f32.mrf.mxu1 }
 0x1a1   : > { %v912_v41 = vadd.f32 %v911_v11, %v847_v2  ;;  %1105 = vmatmul.f32.gmra.mxu0 %v1989_v36  ;;  %1235 = vmatmul.f32.gmra.mxu2 %v3146_v20  ;;  %v1992_v20 = vld [vmem:[%s2237_s30 + $0x288] sm:$0xff] }
 0x1a3   : > { %1338 = vst [vmem:[#allocation2 + $0xc0] sm:$0xff] %v912_v41  ;;  %1170 = vmatmul.f32.gmra.mxu1 %v1990_v19 }
 0x1a4   : > { %1300 = vmatmul.f32.gmra.mxu3 %v3152_v38  ;;  %v976_v40 = vpop.f32.mrf.mxu2 }
 0x1a5   : > { %v977_v17 = vadd.f32 %v976_v40, %v3203_v33 }
 0x1a6   : > { %v849_v26 = vpop.f32.mrf.mxu0 }
 0x1a7   : > { %v850_v59 = vadd.f32 %v849_v26, %v3175_v22  ;;  %v1041_v6 = vpop.f32.mrf.mxu3 }
 0x1a8   : > { %v3305_v56 = vadd.f32 %v1041_v6, %v977_v17  ;;  %v914_v3 = vpop.f32.mrf.mxu1 }
 0x1a9   : > { %v915_v62 = vadd.f32 %v914_v3, %v850_v59  ;;  %1108 = vmatmul.f32.gmra.mxu0 %v1991_v27  ;;  %1238 = vmatmul.f32.gmra.mxu2 %v3159_v23  ;;  %v1994_v23 = vld [vmem:[%s2237_s30 + $0x2b8] sm:$0xff] }
 0x1ab   : > { %1340 = vst [vmem:[#allocation2 + $0xd0] sm:$0xff] %v915_v62  ;;  %1173 = vmatmul.f32.gmra.mxu1 %v1992_v20 }
 0x1ac   : > { %1303 = vmatmul.f32.gmra.mxu3 %v3165_v47  ;;  %v979_v38 = vpop.f32.mrf.mxu2 }
 0x1ad   : > { %v980_v15 = vadd.f32 %v979_v38, %v3203_v33 }
 0x1ae   : > { %v852_v22 = vpop.f32.mrf.mxu0 }
 0x1af   : > { %v853_v42 = vadd.f32 %v852_v22, %v3188_v60  ;;  %v1044_v12 = vpop.f32.mrf.mxu3 }
 0x1b0   : > { %v3313_v58 = vadd.f32 %v1044_v12, %v980_v15  ;;  %v917_v45 = vpop.f32.mrf.mxu1 }
 0x1b1   : > { %v918_v63 = vadd.f32 %v917_v45, %v853_v42  ;;  %1111 = vmatmul.f32.gmra.mxu0 %v1993_v51  ;;  %1241 = vmatmul.f32.gmra.mxu2 %v3172_v48  ;;  %v1996_v48 = vld [vmem:[%s2237_s30 + $0x2e8] sm:$0xff] }
 0x1b3   : > { %1342 = vst [vmem:[#allocation2 + $0xe0] sm:$0xff] %v918_v63  ;;  %1176 = vmatmul.f32.gmra.mxu1 %v1994_v23 }
 0x1b4   : > { %1306 = vmatmul.f32.gmra.mxu3 %v3178_v13  ;;  %v982_v47 = vpop.f32.mrf.mxu2 }
 0x1b5   : > { %v983_v53 = vadd.f32 %v982_v47, %v3203_v33 }
 0x1b6   : > { %v855_v60 = vpop.f32.mrf.mxu0 }
 0x1b7   : > { %v856_v35 = vadd.f32 %v855_v60, %v3198_v34  ;;  %v1047_v30 = vpop.f32.mrf.mxu3 }
 0x1b8   : > { %v3321_v5 = vadd.f32 %v1047_v30, %v983_v53  ;;  %v920_v37 = vpop.f32.mrf.mxu1 }
 0x1b9   : > { %v921_v50 = vadd.f32 %v920_v37, %v856_v35  ;;  %1114 = vmatmul.f32.gmra.mxu0 %v1995_v16  ;;  %1244 = vmatmul.f32.gmra.mxu2 %v3185_v28 }
 0x1bb   : > { %1344 = vst [vmem:[#allocation2 + $0xf0] sm:$0xff] %v921_v50  ;;  %1179 = vmatmul.f32.gmra.mxu1 %v1996_v48 }
 0x1bc   : > { %1309 = vmatmul.f32.gmra.mxu3 %v3191_v49  ;;  %v985_v13 = vpop.f32.mrf.mxu2 }
 0x1bd   : > { %v986_v61 = vadd.f32 %v985_v13, %v3203_v33 }
 0x1be   : > { %v1070_v10 = vpop.f32.mrf.mxu0 }
 0x1bf   : > { %v1050_v29 = vpop.f32.mrf.mxu3  ;;  %v1071_v34 = vadd.f32 %v1070_v10, %v3209_v54 }
 0x1c0   : > { %v3329_v24 = vadd.f32 %v1050_v29, %v986_v61  ;;  %v1135_v52 = vpop.f32.mrf.mxu1 }
 0x1c1   : > { %v1136_v55 = vadd.f32 %v1135_v52, %v1071_v34 }
 0x1c4   : > { %v1200_v25 = vpop.f32.mrf.mxu2 }
 0x1c5   : > { %v1201_v39 = vadd.f32 %v1200_v25, %v1136_v55 }
 0x1c6   : > { %v1073_v1 = vpop.f32.mrf.mxu0 }
 0x1c7   : > { %v1074_v28 = vadd.f32 %v1073_v1, %v3217_v8  ;;  %v1265_v32 = vpop.f32.mrf.mxu3 }
 0x1c8   : > { %v1266_v4 = vadd.f32 %v1265_v32, %v1201_v39  ;;  %v1138_v49 = vpop.f32.mrf.mxu1 }
 0x1c9   : > { %v1139_v33 = vadd.f32 %v1138_v49, %v1074_v28 }
 0x1ca   : > { %1315 = vst.msk [vmem:[#allocation2 + $0x8] sm:$0xff] %vm1314_vm0, %v1266_v4 }
 0x1cc   : > { %v1203_v2 = vpop.f32.mrf.mxu2 }
 0x1cd   : > { %v1204_v14 = vadd.f32 %v1203_v2, %v1139_v33 }
 0x1ce   : > { %v1076_v11 = vpop.f32.mrf.mxu0 }
 0x1cf   : > { %v1077_v54 = vadd.f32 %v1076_v11, %v3225_v31  ;;  %v1268_v41 = vpop.f32.mrf.mxu3 }
 0x1d0   : > { %v1269_v36 = vadd.f32 %v1268_v41, %v1204_v14  ;;  %v1141_v19 = vpop.f32.mrf.mxu1 }
 0x1d1   : > { %v1142_v40 = vadd.f32 %v1141_v19, %v1077_v54 }
 0x1d2   : > { %1317 = vst.msk [vmem:[#allocation2 + $0x18] sm:$0xff] %vm1314_vm0, %v1269_v36 }
 0x1d4   : > { %v1206_v17 = vpop.f32.mrf.mxu2 }
 0x1d5   : > { %v1207_v8 = vadd.f32 %v1206_v17, %v1142_v40 }
 0x1d6   : > { %v1079_v26 = vpop.f32.mrf.mxu0 }
 0x1d7   : > { %v1080_v59 = vadd.f32 %v1079_v26, %v3233_v44  ;;  %v1271_v6 = vpop.f32.mrf.mxu3 }
 0x1d8   : > { %v1272_v3 = vadd.f32 %v1271_v6, %v1207_v8  ;;  %v1144_v62 = vpop.f32.mrf.mxu1 }
 0x1d9   : > { %v1145_v27 = vadd.f32 %v1144_v62, %v1080_v59 }
 0x1da   : > { %1319 = vst.msk [vmem:[#allocation2 + $0x28] sm:$0xff] %vm1314_vm0, %v1272_v3 }
 0x1dc   : > { %v1209_v20 = vpop.f32.mrf.mxu2 }
 0x1dd   : > { %v1210_v38 = vadd.f32 %v1209_v20, %v1145_v27 }
 0x1de   : > { %v1082_v31 = vpop.f32.mrf.mxu0 }
 0x1df   : > { %v1083_v15 = vadd.f32 %v1082_v31, %v3241_v9  ;;  %v1274_v22 = vpop.f32.mrf.mxu3 }
 0x1e0   : > { %v1275_v42 = vadd.f32 %v1274_v22, %v1210_v38  ;;  %v1147_v12 = vpop.f32.mrf.mxu1 }
 0x1e1   : > { %v1148_v45 = vadd.f32 %v1147_v12, %v1083_v15 }
 0x1e2   : > { %1321 = vst.msk [vmem:[#allocation2 + $0x38] sm:$0xff] %vm1314_vm0, %v1275_v42 }
 0x1e4   : > { %v1212_v63 = vpop.f32.mrf.mxu2 }
 0x1e5   : > { %v1213_v51 = vadd.f32 %v1212_v63, %v1148_v45 }
 0x1e6   : > { %v1085_v44 = vpop.f32.mrf.mxu0 }
 0x1e7   : > { %v1086_v23 = vadd.f32 %v1085_v44, %v3249_v21  ;;  %v1277_v47 = vpop.f32.mrf.mxu3 }
 0x1e8   : > { %v1278_v53 = vadd.f32 %v1277_v47, %v1213_v51  ;;  %v1150_v60 = vpop.f32.mrf.mxu1 }
 0x1e9   : > { %v1151_v35 = vadd.f32 %v1150_v60, %v1086_v23 }
 0x1ea   : > { %1323 = vst.msk [vmem:[#allocation2 + $0x48] sm:$0xff] %vm1314_vm0, %v1278_v53 }
 0x1ec   : > { %v1215_v30 = vpop.f32.mrf.mxu2 }
 0x1ed   : > { %v1216_v37 = vadd.f32 %v1215_v30, %v1151_v35 }
 0x1ee   : > { %v1088_v9 = vpop.f32.mrf.mxu0 }
 0x1ef   : > { %v1089_v50 = vadd.f32 %v1088_v9, %v3257_v57  ;;  %v1280_v16 = vpop.f32.mrf.mxu3 }
 0x1f0   : > { %v1281_v48 = vadd.f32 %v1280_v16, %v1216_v37  ;;  %v1153_v13 = vpop.f32.mrf.mxu1 }
 0x1f1   : > { %v1154_v61 = vadd.f32 %v1153_v13, %v1089_v50 }
 0x1f2   : > { %1325 = vst.msk [vmem:[#allocation2 + $0x58] sm:$0xff] %vm1314_vm0, %v1281_v48 }
 0x1f4   : > { %v1218_v10 = vpop.f32.mrf.mxu2 }
 0x1f5   : > { %v1219_v29 = vadd.f32 %v1218_v10, %v1154_v61 }
 0x1f6   : > { %v1091_v21 = vpop.f32.mrf.mxu0 }
 0x1f7   : > { %v1092_v34 = vadd.f32 %v1091_v21, %v3265_v0  ;;  %v1283_v52 = vpop.f32.mrf.mxu3 }
 0x1f8   : > { %v1284_v55 = vadd.f32 %v1283_v52, %v1219_v29  ;;  %v1156_v25 = vpop.f32.mrf.mxu1 }
 0x1f9   : > { %v1157_v39 = vadd.f32 %v1156_v25, %v1092_v34 }
 0x1fa   : > { %1327 = vst.msk [vmem:[#allocation2 + $0x68] sm:$0xff] %vm1314_vm0, %v1284_v55 }
 0x1fc   : > { %v1221_v1 = vpop.f32.mrf.mxu2 }
 0x1fd   : > { %v1222_v28 = vadd.f32 %v1221_v1, %v1157_v39 }
 0x1fe   : > { %v1094_v57 = vpop.f32.mrf.mxu0 }
 0x1ff   : > { %v1095_v32 = vadd.f32 %v1094_v57, %v3273_v18  ;;  %v1286_v4 = vpop.f32.mrf.mxu3 }
 0x200   : > { %v1287_v49 = vadd.f32 %v1286_v4, %v1222_v28  ;;  %v1159_v33 = vpop.f32.mrf.mxu1 }
 0x201   : > { %v1160_v2 = vadd.f32 %v1159_v33, %v1095_v32 }
 0x202   : > { %1329 = vst.msk [vmem:[#allocation2 + $0x78] sm:$0xff] %vm1314_vm0, %v1287_v49 }
 0x204   : > { %v1224_v14 = vpop.f32.mrf.mxu2 }
 0x205   : > { %v1225_v11 = vadd.f32 %v1224_v14, %v1160_v2 }
 0x206   : > { %v1097_v0 = vpop.f32.mrf.mxu0 }
 0x207   : > { %v1098_v54 = vadd.f32 %v1097_v0, %v3281_v46  ;;  %v1289_v41 = vpop.f32.mrf.mxu3 }
 0x208   : > { %v1290_v36 = vadd.f32 %v1289_v41, %v1225_v11  ;;  %v1162_v19 = vpop.f32.mrf.mxu1 }
 0x209   : > { %v1163_v40 = vadd.f32 %v1162_v19, %v1098_v54 }
 0x20a   : > { %1331 = vst.msk [vmem:[#allocation2 + $0x88] sm:$0xff] %vm1314_vm0, %v1290_v36 }
 0x20c   : > { %v1227_v17 = vpop.f32.mrf.mxu2 }
 0x20d   : > { %v1228_v8 = vadd.f32 %v1227_v17, %v1163_v40 }
 0x20e   : > { %v1100_v18 = vpop.f32.mrf.mxu0 }
 0x20f   : > { %v1101_v26 = vadd.f32 %v1100_v18, %v3289_v43  ;;  %v1292_v59 = vpop.f32.mrf.mxu3 }
 0x210   : > { %v1293_v6 = vadd.f32 %v1292_v59, %v1228_v8  ;;  %v1165_v3 = vpop.f32.mrf.mxu1 }
 0x211   : > { %v1166_v62 = vadd.f32 %v1165_v3, %v1101_v26 }
 0x212   : > { %1333 = vst.msk [vmem:[#allocation2 + $0x98] sm:$0xff] %vm1314_vm0, %v1293_v6 }
 0x214   : > { %v1230_v27 = vpop.f32.mrf.mxu2 }
 0x215   : > { %v1231_v20 = vadd.f32 %v1230_v27, %v1166_v62 }
 0x216   : > { %v1103_v46 = vpop.f32.mrf.mxu0 }
 0x217   : > { %v1104_v38 = vadd.f32 %v1103_v46, %v3297_v7  ;;  %v1295_v31 = vpop.f32.mrf.mxu3 }
 0x218   : > { %v1296_v15 = vadd.f32 %v1295_v31, %v1231_v20  ;;  %v1168_v22 = vpop.f32.mrf.mxu1 }
 0x219   : > { %v1169_v42 = vadd.f32 %v1168_v22, %v1104_v38 }
 0x21a   : > { %1335 = vst.msk [vmem:[#allocation2 + $0xa8] sm:$0xff] %vm1314_vm0, %v1296_v15 }
 0x21c   : > { %v1233_v12 = vpop.f32.mrf.mxu2 }
 0x21d   : > { %v1234_v45 = vadd.f32 %v1233_v12, %v1169_v42 }
 0x21e   : > { %v1106_v43 = vpop.f32.mrf.mxu0 }
 0x21f   : > { %v1107_v63 = vadd.f32 %v1106_v43, %v3305_v56  ;;  %v1298_v51 = vpop.f32.mrf.mxu3 }
 0x220   : > { %v1299_v44 = vadd.f32 %v1298_v51, %v1234_v45  ;;  %v1171_v23 = vpop.f32.mrf.mxu1 }
 0x221   : > { %v1172_v47 = vadd.f32 %v1171_v23, %v1107_v63 }
 0x222   : > { %1337 = vst.msk [vmem:[#allocation2 + $0xb8] sm:$0xff] %vm1314_vm0, %v1299_v44 }
 0x224   : > { %v1236_v53 = vpop.f32.mrf.mxu2 }
 0x225   : > { %v1237_v60 = vadd.f32 %v1236_v53, %v1172_v47 }
 0x226   : > { %v1109_v7 = vpop.f32.mrf.mxu0 }
 0x227   : > { %v1110_v35 = vadd.f32 %v1109_v7, %v3313_v58  ;;  %v1301_v30 = vpop.f32.mrf.mxu3 }
 0x228   : > { %v1302_v37 = vadd.f32 %v1301_v30, %v1237_v60  ;;  %v1174_v9 = vpop.f32.mrf.mxu1 }
 0x229   : > { %v1175_v50 = vadd.f32 %v1174_v9, %v1110_v35 }
 0x22a   : > { %1339 = vst.msk [vmem:[#allocation2 + $0xc8] sm:$0xff] %vm1314_vm0, %v1302_v37 }
 0x22c   : > { %v1239_v16 = vpop.f32.mrf.mxu2 }
 0x22d   : > { %v1240_v48 = vadd.f32 %v1239_v16, %v1175_v50 }
 0x22e   : > { %v1112_v56 = vpop.f32.mrf.mxu0 }
 0x22f   : > { %v1113_v13 = vadd.f32 %v1112_v56, %v3321_v5  ;;  %v1304_v61 = vpop.f32.mrf.mxu3 }
 0x230   : > { %v1305_v10 = vadd.f32 %v1304_v61, %v1240_v48  ;;  %v1177_v29 = vpop.f32.mrf.mxu1 }
 0x231   : > { %v1178_v21 = vadd.f32 %v1177_v29, %v1113_v13 }
 0x232   : > { %1341 = vst.msk [vmem:[#allocation2 + $0xd8] sm:$0xff] %vm1314_vm0, %v1305_v10 }
 0x234   : > { %v1242_v34 = vpop.f32.mrf.mxu2 }
 0x235   : > { %v1243_v52 = vadd.f32 %v1242_v34, %v1178_v21 }
 0x236   : > { %v1115_v58 = vpop.f32.mrf.mxu0 }
 0x237   : > { %v1116_v55 = vadd.f32 %v1115_v58, %v3329_v24  ;;  %v1307_v25 = vpop.f32.mrf.mxu3 }
 0x238   : > { %v1308_v39 = vadd.f32 %v1307_v25, %v1243_v52  ;;  %v1180_v1 = vpop.f32.mrf.mxu1 }
 0x239   : > { %v1181_v28 = vadd.f32 %v1180_v1, %v1116_v55 }
 0x23a   : > { %1343 = vst.msk [vmem:[#allocation2 + $0xe8] sm:$0xff] %vm1314_vm0, %v1308_v39 }
 0x23c   : > { %v1245_v57 = vpop.f32.mrf.mxu2 }
 0x23d   : > { %v1246_v32 = vadd.f32 %v1245_v57, %v1181_v28 }
 0x23f   : > { %v1310_v5 = vpop.f32.mrf.mxu3 }
 0x240   : > { %v1311_v4 = vadd.f32 %v1310_v5, %v1246_v32 }
 0x242   : > { %1345 = vst.msk [vmem:[#allocation2 + $0xf8] sm:$0xff] %vm1314_vm0, %v1311_v4 }
 0x243 PF: > { %v1375_v49 = vld [vmem:[#allocation2 + $0xf0] sm:$0xff]  ;;  %s2125_s30 = smov 64   ;;  %v1374_v24 = vld [vmem:[#allocation2 + $0xe0] sm:$0xff]  ;;  %vm1440_vm1 = vcmask 523264   ;;  %s1824_s24 = sshll.u32 %s2107_s18, 6  ;;  %v1390_v4 = vld [vmem:[#allocation2 + $0xe8] sm:$0xff] }
 0x244   : > { %v1373_v33 = vld [vmem:[#allocation2 + $0xd0] sm:$0xff]  ;;  %1438 = vrot.lane.b32.xlu0 %v1375_v49, %s2125_s30  ;;  %v1372_v14 = vld [vmem:[#allocation2 + $0xc0] sm:$0xff]  ;;  %s1347_s20 = sshra.s32 %s1824_s24, 3  ;;  %v1389_v49 = vld [vmem:[#allocation2 + $0xd8] sm:$0xff]  ;;  %s1853_s27 = sshll.u32 %s2111_s19, 4 }
 0x245   : > { %1434 = vrot.lane.b32.xlu1 %v1373_v33, %s2125_s30  ;;  %v1371_v2 = vld [vmem:[#allocation2 + $0xb0] sm:$0xff]  ;;  %v1370_v11 = vld [vmem:[#allocation2 + $0xa0] sm:$0xff]  ;;  %s1857_s21 = sshll.u32 %s1347_s20, 4  ;;  %s1692_s5 = sadd.s32 %s1853_s27, %s2229_s10 }
 0x246   : > { %1430 = vrot.lane.b32.xlu2 %v1371_v2, %s2125_s30  ;;  %v1369_v0 = vld [vmem:[#allocation2 + $0x90] sm:$0xff]  ;;  %v1368_v54 = vld [vmem:[#allocation2 + $0x80] sm:$0xff]  ;;  %s1351_s18 = scalar_lea.vmem [#allocation2], %s1857_s21  ;;  %v1388_v2 = vld [vmem:[#allocation2 + $0xc8] sm:$0xff]  ;;  %s1854_s6 = sshll.u32 %s1692_s5, 3 }
 0x247   : > { %v1367_v41 = vld [vmem:[#allocation2 + $0x70] sm:$0xff]  ;;  %v1366_v36 = vld [vmem:[#allocation2 + $0x60] sm:$0xff]  ;;  %s1694_s13 = scalar_lea.hbm %s3513_s4, %s1854_s6  ;;  %s1695_s14 = sshll.u32 %s2244_s25, 4  ;;  %s1696_s14 = int_to_ptr.vmem [resolvable:$true] %s1695_s14 }
 0x248   : > { %v1365_v19 = vld [vmem:[#allocation2 + $0x50] sm:$0xff]  ;;  %v1364_v40 = vld [vmem:[#allocation2 + $0x40] sm:$0xff]  ;;  %s1697_s26 = sshll.u32 %s1694_s13, 4  ;;  %s3525_s9 = sand.u32 1, %s2099_s16   ;;  %s1698_s26 = int_to_ptr.hbm [resolvable:$true] %s1697_s26 }
 0x249   : > { %v1363_v17 = vld [vmem:[#allocation2 + $0x30] sm:$0xff]  ;;  %v1362_v8 = vld [vmem:[#allocation2 + $0x20] sm:$0xff]  ;;  %v1391_v5 = vld [vmem:[#allocation2 + $0xf8] sm:$0xff]  ;;  %s1677_s23 = scalar_lea.sflag [#allocation4], %s3525_s9  ;;  %s2049_s20 = scalar_lea.hbm %s3513_s4, 256 }
 0x24a   : > { %v1361_v18 = vld [vmem:[#allocation2 + $0x10] sm:$0xff]  ;;  %v1360_v26 = vld [vmem:[#allocation2] sm:$0xff]  ;;  %1610 = vmatpush.msra.mxu1 %v1391_v5 }
 0x24b   : > { %v1352_v51 = vld [vmem:[%s1351_s18] sm:$0xff]  ;;  %v1353_v44 = vld [vmem:[%s1351_s18 + $0x10] sm:$0xff] }
 0x24c   : > { %1436 = vrot.lane.b32.xlu0 %v1374_v24, %s2125_s30  ;;  %v1356_v23 = vld [vmem:[%s1351_s18 + $0x40] sm:$0xff]  ;;  %v1357_v53 = vld [vmem:[%s1351_s18 + $0x50] sm:$0xff]  ;;  %1611 = vmatpush.msra.mxu1 %v1390_v4 }
 0x24d   : > { %1432 = vrot.lane.b32.xlu1 %v1372_v14, %s2125_s30  ;;  %v1354_v47 = vld [vmem:[%s1351_s18 + $0x20] sm:$0xff]  ;;  %v1355_v60 = vld [vmem:[%s1351_s18 + $0x30] sm:$0xff] }
 0x24e   : > { %1428 = vrot.lane.b32.xlu2 %v1370_v11, %s2125_s30  ;;  %v1358_v7 = vld [vmem:[%s1351_s18 + $0x60] sm:$0xff]  ;;  %v1359_v35 = vld [vmem:[%s1351_s18 + $0x70] sm:$0xff]  ;;  %1612 = vmatpush.msra.mxu1 %v1389_v49 }
 0x250   : > { %1613 = vmatpush.msra.mxu1 %v1388_v2 }
 0x254   : > { %1426 = vrot.lane.b32.xlu0 %v1369_v0, %s2125_s30  ;;  %v1387_v0 = vld [vmem:[#allocation2 + $0xb8] sm:$0xff] }
 0x255   : > { %1424 = vrot.lane.b32.xlu1 %v1368_v54, %s2125_s30  ;;  %1614 = vmatpush.msra.mxu1 %v1387_v0 }
 0x256   : > { %1422 = vrot.lane.b32.xlu2 %v1367_v41, %s2125_s30 }
 0x25c   : > { %1420 = vrot.lane.b32.xlu0 %v1366_v36, %s2125_s30 }
 0x25d   : > { %1418 = vrot.lane.b32.xlu1 %v1365_v19, %s2125_s30  ;;  %v1386_v19 = vld [vmem:[#allocation2 + $0xa8] sm:$0xff] }
 0x25e   : > { %1416 = vrot.lane.b32.xlu2 %v1364_v40, %s2125_s30  ;;  %v1385_v40 = vld [vmem:[#allocation2 + $0x98] sm:$0xff]  ;;  %1615 = vmatpush.msra.mxu1 %v1386_v19 }
 0x260   : > { %1616 = vmatpush.msra.mxu1 %v1385_v40 }
 0x264   : > { %1414 = vrot.lane.b32.xlu0 %v1363_v17, %s2125_s30 }
 0x265   : > { %1412 = vrot.lane.b32.xlu1 %v1362_v8, %s2125_s30 }
 0x266   : > { %1410 = vrot.lane.b32.xlu2 %v1361_v18, %s2125_s30  ;;  %v1384_v18 = vld [vmem:[#allocation2 + $0x88] sm:$0xff] }
 0x267   : > { %1617 = vmatpush.msra.mxu1 %v1384_v18 }
 0x26c   : > { %1408 = vrot.lane.b32.xlu0 %v1360_v26, %s2125_s30  ;;  %s2043_s30 = sshra.s32 %s1698_s26, 4  ;;  %s2044_s30 = int_to_ptr.hbm [resolvable:$true] %s2043_s30 }
 0x26d   : > { %s2045_s24 = scalar_lea.hbm %s2044_s30, 64  ;;  %p2050_p5 = scmp.lt.s32.totalorder %s2044_s30, %s3513_s4 }
 0x26e   : > { %p2046_p1 = scmp.ne.s32.totalorder %s2044_s30, %s2045_s24  ;;  %p2051_p6 = scmp.lt.s32.totalorder %s2049_s20, %s2045_s24 }
 0x270   : > { %p2047_p2 = pnand %p2046_p1, %p2204_p3  ;;  %p2052_p7 = por %p2051_p6, %p2050_p5 }
 0x272   : > { %p2048_p4 = pneg %p2047_p2 }
 0x274   : > { %p2053_p9 = pnand %p2052_p7, %p2048_p4 }
 0x2a0   : > { %v1431_v62 = vpop.permute.xlu2 %1430 }
 0x2a8   : > { %v1429_v20 = vpop.permute.xlu2 %1428 }
 0x2b0   : > { %v1423_v31 = vpop.permute.xlu2 %1422 }
 0x2b6   : > { %v1439_v59 = vpop.permute.xlu0 %1438 }
 0x2b7   : > { %1827 = vmatpush.xpose.msk.msra.mxu0 %vm1440_vm1, %v1439_v59  ;;  %1858 = vmatpush.xpose.msk.msra.mxu2 %vm1440_vm1, %v1439_v59  ;;  %v1435_v6 = vpop.permute.xlu1 %1434 }
 0x2b8   : > { %1859 = vmatpush.xpose.msk.msra.mxu3 %vm1440_vm1, %v1439_v59  ;;  %v1417_v42 = vpop.permute.xlu2 %1416  ;;  %v1383_v59 = vld [vmem:[#allocation2 + $0x78] sm:$0xff] }
 0x2b9   : > { %1618 = vmatpush.msra.mxu1 %v1383_v59 }
 0x2be   : > { %v1437_v3 = vpop.permute.xlu0 %1436 }
 0x2bf   : > { %1828 = vmatpush.xpose.msk.msra.mxu0 %vm1440_vm1, %v1437_v3  ;;  %1860 = vmatpush.xpose.msk.msra.mxu2 %vm1440_vm1, %v1437_v3  ;;  %v1433_v27 = vpop.permute.xlu1 %1432 }
 0x2c0   : > { %1861 = vmatpush.xpose.msk.msra.mxu3 %vm1440_vm1, %v1437_v3  ;;  %v1411_v43 = vpop.permute.xlu2 %1410 }
 0x2c3   : > { %1829 = vmatpush.xpose.msk.msra.mxu0 %vm1440_vm1, %v1435_v6  ;;  %1862 = vmatpush.xpose.msk.msra.mxu2 %vm1440_vm1, %v1435_v6 }
 0x2c4   : > { %1863 = vmatpush.xpose.msk.msra.mxu3 %vm1440_vm1, %v1435_v6 }
 0x2c6   : > { %v1427_v46 = vpop.permute.xlu0 %1426 }
 0x2c7   : > { %1830 = vmatpush.xpose.msk.msra.mxu0 %vm1440_vm1, %v1433_v27  ;;  %1864 = vmatpush.xpose.msk.msra.mxu2 %vm1440_vm1, %v1433_v27  ;;  %v1425_v38 = vpop.permute.xlu1 %1424 }
 0x2c8   : > { %1865 = vmatpush.xpose.msk.msra.mxu3 %vm1440_vm1, %v1433_v27  ;;  %v1381_v27 = vld [vmem:[#allocation2 + $0x58] sm:$0xff] }
 0x2cb   : > { %1831 = vmatpush.xpose.msk.msra.mxu0 %vm1440_vm1, %v1431_v62  ;;  %1866 = vmatpush.xpose.msk.msra.mxu2 %vm1440_vm1, %v1431_v62 }
 0x2cc   : > { %1867 = vmatpush.xpose.msk.msra.mxu3 %vm1440_vm1, %v1431_v62  ;;  %v1382_v62 = vld [vmem:[#allocation2 + $0x68] sm:$0xff] }
 0x2cd   : > { %1619 = vmatpush.msra.mxu1 %v1382_v62 }
 0x2ce   : > { %v1421_v15 = vpop.permute.xlu0 %1420 }
 0x2cf   : > { %1832 = vmatpush.xpose.msk.msra.mxu0 %vm1440_vm1, %v1429_v20  ;;  %1868 = vmatpush.xpose.msk.msra.mxu2 %vm1440_vm1, %v1429_v20  ;;  %v1419_v22 = vpop.permute.xlu1 %1418 }
 0x2d0   : > { %1869 = vmatpush.xpose.msk.msra.mxu3 %vm1440_vm1, %v1429_v20  ;;  %1620 = vmatpush.msra.mxu1 %v1381_v27 }
 0x2d3   : > { %1833 = vmatpush.xpose.msk.msra.mxu0 %vm1440_vm1, %v1427_v46  ;;  %1870 = vmatpush.xpose.msk.msra.mxu2 %vm1440_vm1, %v1427_v46 }
 0x2d4   : > { %1871 = vmatpush.xpose.msk.msra.mxu3 %vm1440_vm1, %v1427_v46 }
 0x2d6   : > { %v1415_v12 = vpop.permute.xlu0 %1414 }
 0x2d7   : > { %1834 = vmatpush.xpose.msk.msra.mxu0 %vm1440_vm1, %v1425_v38  ;;  %1872 = vmatpush.xpose.msk.msra.mxu2 %vm1440_vm1, %v1425_v38  ;;  %v1413_v45 = vpop.permute.xlu1 %1412 }
 0x2d8   : > { %1873 = vmatpush.xpose.msk.msra.mxu3 %vm1440_vm1, %v1425_v38 }
 0x2db   : > { %1835 = vmatpush.xpose.msk.msra.mxu0 %vm1440_vm1, %v1423_v31  ;;  %1874 = vmatpush.xpose.msk.msra.mxu2 %vm1440_vm1, %v1423_v31 }
 0x2dc   : > { %1875 = vmatpush.xpose.msk.msra.mxu3 %vm1440_vm1, %v1423_v31 }
 0x2de   : > { %v1409_v63 = vpop.permute.xlu0 %1408 }
 0x2df   : > { %1836 = vmatpush.xpose.msk.msra.mxu0 %vm1440_vm1, %v1421_v15  ;;  %1876 = vmatpush.xpose.msk.msra.mxu2 %vm1440_vm1, %v1421_v15 }
 0x2e0   : > { %1877 = vmatpush.xpose.msk.msra.mxu3 %vm1440_vm1, %v1421_v15 }
 0x2e3   : > { %1837 = vmatpush.xpose.msk.msra.mxu0 %vm1440_vm1, %v1419_v22  ;;  %1878 = vmatpush.xpose.msk.msra.mxu2 %vm1440_vm1, %v1419_v22 }
 0x2e4   : > { %1879 = vmatpush.xpose.msk.msra.mxu3 %vm1440_vm1, %v1419_v22 }
 0x2e7   : > { %1838 = vmatpush.xpose.msk.msra.mxu0 %vm1440_vm1, %v1417_v42  ;;  %1880 = vmatpush.xpose.msk.msra.mxu2 %vm1440_vm1, %v1417_v42 }
 0x2e8   : > { %1881 = vmatpush.xpose.msk.msra.mxu3 %vm1440_vm1, %v1417_v42  ;;  %v1380_v42 = vld [vmem:[#allocation2 + $0x48] sm:$0xff] }
 0x2e9   : > { %1621 = vmatpush.msra.mxu1 %v1380_v42 }
 0x2eb   : > { %1839 = vmatpush.xpose.msk.msra.mxu0 %vm1440_vm1, %v1415_v12  ;;  %1882 = vmatpush.xpose.msk.msra.mxu2 %vm1440_vm1, %v1415_v12 }
 0x2ec   : > { %1883 = vmatpush.xpose.msk.msra.mxu3 %vm1440_vm1, %v1415_v12  ;;  %v1379_v12 = vld [vmem:[#allocation2 + $0x38] sm:$0xff] }
 0x2ed   : > { %1622 = vmatpush.msra.mxu1 %v1379_v12 }
 0x2ef   : > { %1840 = vmatpush.xpose.msk.msra.mxu0 %vm1440_vm1, %v1413_v45  ;;  %1884 = vmatpush.xpose.msk.msra.mxu2 %vm1440_vm1, %v1413_v45 }
 0x2f0   : > { %1885 = vmatpush.xpose.msk.msra.mxu3 %vm1440_vm1, %v1413_v45  ;;  %v1378_v45 = vld [vmem:[#allocation2 + $0x28] sm:$0xff] }
 0x2f1   : > { %1623 = vmatpush.msra.mxu1 %v1378_v45 }
 0x2f3   : > { %1841 = vmatpush.xpose.msk.msra.mxu0 %vm1440_vm1, %v1411_v43  ;;  %1886 = vmatpush.xpose.msk.msra.mxu2 %vm1440_vm1, %v1411_v43 }
 0x2f4   : > { %1887 = vmatpush.xpose.msk.msra.mxu3 %vm1440_vm1, %v1411_v43  ;;  %v1377_v43 = vld [vmem:[#allocation2 + $0x18] sm:$0xff] }
 0x2f5   : > { %1624 = vmatpush.msra.mxu1 %v1377_v43 }
 0x2f7   : > { %1842 = vmatpush.xpose.msk.msra.mxu0 %vm1440_vm1, %v1409_v63  ;;  %1888 = vmatpush.xpose.msk.msra.mxu2 %vm1440_vm1, %v1409_v63 }
 0x2f8   : > { %1889 = vmatpush.xpose.msk.msra.mxu3 %vm1440_vm1, %v1409_v63  ;;  %v1376_v63 = vld [vmem:[#allocation2 + $0x8] sm:$0xff] }
 0x2f9   : > { %1625 = vmatpush.msra.mxu1 %v1376_v63 }
 0x2fa   : > { %1843 = vmatmul.msk.f32.vlgmr.msra.gmra.mxu0 %vm1440_vm1, %v1352_v51  ;;  %1844 = vmatmul.msk.f32.vlgmr.msra.gmra.mxu2 %vm1440_vm1, %v1353_v44 }
 0x2fb   : > { %1847 = vmatmul.msk.f32.vlgmr.msra.gmra.mxu3 %vm1440_vm1, %v1356_v23 }
 0x302   : > { %1845 = vmatmul.msk.f32.gmra.mxu2 %vm1440_vm1, %v1354_v47 }
 0x303   : > { %1848 = vmatmul.msk.f32.gmra.mxu3 %vm1440_vm1, %v1357_v53 }
 0x30a   : > { %1846 = vmatmul.msk.f32.gmra.mxu2 %vm1440_vm1, %v1355_v60 }
 0x30b   : > { %1849 = vmatmul.msk.f32.gmra.mxu3 %vm1440_vm1, %v1358_v7 }
 0x313   : > { %1850 = vmatmul.msk.f32.gmra.mxu3 %vm1440_vm1, %v1359_v35 }
 0x377   : > { %v1514_v30 = vpop.f32.mrf.mxu0 }
 0x378   : > { %1538 = vmax.xlane.f32.xlu1 %v1514_v30 }
 0x37d   : > { %v1517_v37 = vpop.f32.mrf.mxu2 }
 0x37e   : > { %v1526_v9 = vpop.f32.mrf.mxu3  ;;  %1540 = vmax.xlane.f32.xlu2 %v1517_v37 }
 0x380   : > { %1546 = vmax.xlane.f32.xlu1 %v1526_v9 }
 0x385   : > { %v1520_v50 = vpop.f32.mrf.mxu2 }
 0x386   : > { %v1529_v16 = vpop.f32.mrf.mxu3  ;;  %1542 = vmax.xlane.f32.xlu0 %v1520_v50 }
 0x38d   : > { %v1523_v48 = vpop.f32.mrf.mxu2 }
 0x38e   : > { %v1532_v56 = vpop.f32.mrf.mxu3  ;;  %1544 = vmax.xlane.f32.xlu2 %v1523_v48 }
 0x38f   : > { %1550 = vmax.xlane.f32.xlu0 %v1532_v56 }
 0x396   : > { %1548 = vmax.xlane.f32.xlu2 %v1529_v16  ;;  %v3419_v13 = vpop.f32.mrf.mxu3 }
 0x39e   : > { %1552 = vmax.xlane.f32.xlu2 %v3419_v13 }
 0x3eb   : > { %v1539_v61 = vpop.xlane.xlu1 %1538 }
 0x3ec   : > { %v1554_v10 = vsub.f32 %v1514_v30, %v1539_v61 }
 0x3ee   : > { %v1562_v29 = vmul.f32 1.442695, %v1554_v10 }
 0x3f0   : > { %1997 = vpow2.f32 %v1562_v29 }
 0x3f1   : > { %v1541_v21 = vpop.xlane.xlu2 %1540 }
 0x3f2   : > { %v1555_v34 = vsub.f32 %v1517_v37, %v1541_v21 }
 0x3f3   : > { %v1547_v52 = vpop.xlane.xlu1 %1546 }
 0x3f4   : > { %v1564_v58 = vmul.f32 1.442695, %v1555_v34  ;;  %v1558_v55 = vsub.f32 %v1526_v9, %v1547_v52 }
 0x3f6   : > { %v3422_v25 = vpop.eup %1997  ;;  %1999 = vpow2.f32 %v1564_v58  ;;  %v1570_v39 = vmul.f32 1.442695, %v1558_v55 }
 0x3f7   : > { %1578 = vadd.xlane.f32.xlu1 %v3422_v25 }
 0x3f8   : > { %2001 = vpow2.f32 %v1570_v39 }
 0x3f9   : > { %v1543_v1 = vpop.xlane.xlu0 %1542 }
 0x3fa   : > { %v1556_v28 = vsub.f32 %v1520_v50, %v1543_v1 }
 0x3fc   : > { %v3425_v57 = vpop.eup %1999  ;;  %v1566_v32 = vmul.f32 1.442695, %v1556_v28 }
 0x3fd   : > { %1580 = vadd.xlane.f32.xlu0 %v3425_v57 }
 0x3fe   : > { %2003 = vpow2.f32 %v1566_v32  ;;  %v3428_v11 = vpop.eup %2001 }
 0x401   : > { %v1545_v33 = vpop.xlane.xlu2 %1544 }
 0x402   : > { %v1551_v24 = vpop.xlane.xlu0 %1550  ;;  %v1557_v14 = vsub.f32 %v1523_v48, %v1545_v33 }
 0x403   : > { %v1560_v36 = vsub.f32 %v1532_v56, %v1551_v24 }
 0x404   : > { %v3430_v54 = vpop.eup %2003  ;;  %v1568_v41 = vmul.f32 1.442695, %v1557_v14 }
 0x405   : > { %1582 = vadd.xlane.f32.xlu1 %v3430_v54  ;;  %1586 = vadd.xlane.f32.xlu0 %v3428_v11  ;;  %v1574_v17 = vmul.f32 1.442695, %v1560_v36 }
 0x406   : > { %2005 = vpow2.f32 %v1568_v41 }
 0x407   : > { %2007 = vpow2.f32 %v1574_v17 }
 0x409   : > { %v1549_v8 = vpop.xlane.xlu2 %1548 }
 0x40a   : > { %v1559_v26 = vsub.f32 %v1529_v16, %v1549_v8 }
 0x40c   : > { %v2006_v6 = vpop.eup %2005  ;;  %v1572_v3 = vmul.f32 1.442695, %v1559_v26 }
 0x40d   : > { %1584 = vadd.xlane.f32.xlu2 %v2006_v6  ;;  %v2008_v38 = vpop.eup %2007 }
 0x40e   : > { %2009 = vpow2.f32 %v1572_v3 }
 0x411   : > { %v1553_v20 = vpop.xlane.xlu2 %1552 }
 0x412   : > { %v1561_v46 = vsub.f32 %v3419_v13, %v1553_v20 }
 0x414   : > { %v2010_v31 = vpop.eup %2009  ;;  %v1576_v15 = vmul.f32 1.442695, %v1561_v46 }
 0x415   : > { %1590 = vadd.xlane.f32.xlu2 %v2008_v38  ;;  %1588 = vadd.xlane.f32.xlu1 %v2010_v31 }
 0x416   : > { %2011 = vpow2.f32 %v1576_v15 }
 0x41c   : > { %v2012_v22 = vpop.eup %2011 }
 0x41d   : > { %1592 = vadd.xlane.f32.xlu0 %v2012_v22 }
 0x46a   : > { %v1579_v51 = vpop.xlane.xlu1 %1578 }
 0x46b   : > { %2013 = vrcp.f32 %v1579_v51 }
 0x470   : > { %v1581_v44 = vpop.xlane.xlu0 %1580 }
 0x471   : > { %v2014_v23 = vpop.eup %2013  ;;  %2015 = vrcp.f32 %v1581_v44 }
 0x472   : > { %v1602_v47 = vmul.f32 %v2014_v23, %v3422_v25 }
 0x474   : > { %1626 = vmatmul.f32.vlgmr.msra.gmra.mxu1 %v1602_v47  ;;  %1659 = vst [vmem:[%s2244_s25] sm:$0xff] %v1602_v47 }
 0x477   : > { %v2016_v53 = vpop.eup %2015 }
 0x478   : > { %v1587_v60 = vpop.xlane.xlu0 %1586  ;;  %v1583_v7 = vpop.xlane.xlu1 %1582  ;;  %v1603_v35 = vmul.f32 %v2016_v53, %v3425_v57 }
 0x479   : > { %2017 = vrcp.f32 %v1587_v60 }
 0x47a   : > { %2019 = vrcp.f32 %v1583_v7  ;;  %1660 = vst [vmem:[%s2244_s25 + $0x8] sm:$0xff] %v1603_v35 }
 0x47c   : > { %1629 = vmatmul.f32.gmra.mxu1 %v1603_v35 }
 0x47f   : > { %v2018_v30 = vpop.eup %2017 }
 0x480   : > { %v2020_v37 = vpop.eup %2019  ;;  %v1585_v9 = vpop.xlane.xlu2 %1584  ;;  %v1606_v50 = vmul.f32 %v2018_v30, %v3428_v11 }
 0x481   : > { %2021 = vrcp.f32 %v1585_v9  ;;  %v1604_v16 = vmul.f32 %v2020_v37, %v3430_v54 }
 0x482   : > { %1663 = vst [vmem:[%s2244_s25 + $0x20] sm:$0xff] %v1606_v50 }
 0x483   : > { %1661 = vst [vmem:[%s2244_s25 + $0x10] sm:$0xff] %v1604_v16 }
 0x484   : > { %1632 = vmatmul.f32.gmra.mxu1 %v1604_v16 }
 0x487   : > { %v2022_v48 = vpop.eup %2021 }
 0x488   : > { %v1591_v56 = vpop.xlane.xlu2 %1590  ;;  %v1589_v13 = vpop.xlane.xlu1 %1588  ;;  %v1605_v61 = vmul.f32 %v2022_v48, %v2006_v6 }
 0x489   : > { %2023 = vrcp.f32 %v1591_v56 }
 0x48a   : > { %2025 = vrcp.f32 %v1589_v13  ;;  %1662 = vst [vmem:[%s2244_s25 + $0x18] sm:$0xff] %v1605_v61 }
 0x48c   : > { %1635 = vmatmul.f32.gmra.mxu1 %v1605_v61 }
 0x48f   : > { %v2024_v10 = vpop.eup %2023 }
 0x490   : > { %v2026_v29 = vpop.eup %2025  ;;  %v1593_v21 = vpop.xlane.xlu0 %1592  ;;  %v1608_v34 = vmul.f32 %v2024_v10, %v2008_v38 }
 0x491   : > { %2027 = vrcp.f32 %v1593_v21  ;;  %v1607_v52 = vmul.f32 %v2026_v29, %v2010_v31 }
 0x492   : > { %1665 = vst [vmem:[%s2244_s25 + $0x30] sm:$0xff] %v1608_v34 }
 0x493   : > { %1664 = vst [vmem:[%s2244_s25 + $0x28] sm:$0xff] %v1607_v52 }
 0x494   : > { %1638 = vmatmul.f32.gmra.mxu1 %v1606_v50 }
 0x497   : > { %v2028_v58 = vpop.eup %2027 }
 0x498   : > { %v1609_v55 = vmul.f32 %v2028_v58, %v2012_v22 }
 0x49a   : > { %1666 = vst [vmem:[%s2244_s25 + $0x38] sm:$0xff] %v1609_v55 }
 0x49c   : > { %1641 = vmatmul.f32.gmra.mxu1 %v1607_v52 }
 0x4a4   : > { %1644 = vmatmul.f32.gmra.mxu1 %v1608_v34 }
 0x4ac   : > { %1647 = vmatmul.f32.gmra.mxu1 %v1609_v55 }
 0x4ad   : > { %2056 = shalt.err (!%p2053_p9)
}
 0x4ae   : > { %s2126_s25 = smov 128   ;;  %s2127_s27 = smov 8  }
 0x4af   : > { %1891 = dma.vmem_to_hbm [thread:$0]  (%p2204_p3), %s1696_s14, 1024, %s1698_s26, %s1677_s23, %s2126_s25, %s2126_s25, %s2127_s27  }
 0x4f1   : > { %v1627_v25 = vpop.f32.mrf.mxu1 }
 0x4f2   : > { %1651 = vst.msk [vmem:[%s2242_s8] sm:$0xff] %vm1440_vm1, %v1627_v25 }
 0x4f9   : > { %v1630_v39 = vpop.f32.mrf.mxu1 }
 0x4fa   : > { %1652 = vst.msk [vmem:[%s2242_s8 + $0x8] sm:$0xff] %vm1440_vm1, %v1630_v39 }
 0x501   : > { %v1633_v1 = vpop.f32.mrf.mxu1 }
 0x502   : > { %1653 = vst.msk [vmem:[%s2242_s8 + $0x10] sm:$0xff] %vm1440_vm1, %v1633_v1 }
 0x509   : > { %v1636_v28 = vpop.f32.mrf.mxu1 }
 0x50a   : > { %1654 = vst.msk [vmem:[%s2242_s8 + $0x18] sm:$0xff] %vm1440_vm1, %v1636_v28 }
 0x511   : > { %v1639_v57 = vpop.f32.mrf.mxu1 }
 0x512   : > { %1655 = vst.msk [vmem:[%s2242_s8 + $0x20] sm:$0xff] %vm1440_vm1, %v1639_v57 }
 0x519   : > { %v1642_v32 = vpop.f32.mrf.mxu1 }
 0x51a   : > { %1656 = vst.msk [vmem:[%s2242_s8 + $0x28] sm:$0xff] %vm1440_vm1, %v1642_v32 }
 0x521   : > { %v1645_v5 = vpop.f32.mrf.mxu1 }
 0x522   : > { %1657 = vst.msk [vmem:[%s2242_s8 + $0x30] sm:$0xff] %vm1440_vm1, %v1645_v5 }
 0x529   : > { %v1648_v4 = vpop.f32.mrf.mxu1 }
 0x52a   : > { %1658 = vst.msk [vmem:[%s2242_s8 + $0x38] sm:$0xff] %vm1440_vm1, %v1648_v4 }
 0x52b PF: > { %p1897_p3 = scmp.ge.s32.totalorder %s2123_s22, 2  ;;  %s1724_s28 = sand.u32 1, %s2095_s15  }
 0x52c   : > { %s1725_s5 = scalar_lea.sflag [#allocation4], %s1724_s28 }
 0x52d   : > { %p1894_p10 = pnand %p1897_p3, %p2213_p8 }
 0x52f   : > { %p1895_p11 = pneg %p1894_p10 }
 0x531   : > { %2090 = dma.done.wait (%p1895_p11), %s1725_s5, 1024  }
 0x532   : > { %2092 = vsyncadd (%p1895_p11), %s1725_s5, 4294966272  ;;  %s18_s22 = sadd.s32 1, %s2123_s22   ;;  %s3526_s18 = sld [smem:[#allocation6_spill]] }
 0x533   : > { %p15_p12 = scmp.ge.s32.totalorder %s18_s22, 6   ;;  %s3527_s19 = sld [smem:[#allocation7_spill]] }
 0x534   : > { %s3528_s20 = sld [smem:[#allocation8_spill]]  ;;  %s3530_s15 = smov %s2099_s16 }
 0x535   : > { %s3529_s21 = sld [smem:[#allocation9_spill]]  ;;  %s3531_s16 = smov %s2103_s17 }
 0x536   : > { %s3532_s17 = smov %s2222_s7  ;;  %17 = sbr.rel (!%p15_p12) target bundleno = 5 (0x5), region = 84 }
 0x53b   :  { %1731 = vsyncpa [#allocation4], 1 }
 0x53c   :  { %1733 = vsyncpa [#allocation4 + $0x1], 1 }

</bundles_post_ra>
